<compile_context>
chip_gen: v7x
topology: tpu7x:2x2x1
jax: 0.10.0
libtpu: 0.0.40
codegen_flags: <defaults>
</compile_context>

<pallas_src>
import functools

import jax
import jax.numpy as jnp
from jax.experimental import pallas as pl
from jax.experimental.pallas import tpu as pltpu


# ----------------------------- Pallas kernel --------------------------------
def _double_critic_kernel(
    s_ref, a_ref,                              # transposed inputs: (S, TB), (A, TB)
    w1_ref,                                    # fused+augmented layer-1: (2*H1, K_aug)
    w2a_ref, b2a_ref, w3a_ref, b3a_ref,        # critic-1 tail
    w2b_ref, b2b_ref, w3b_ref, b3b_ref,        # critic-2 tail
    out_ref,                                   # (2, TB): row 0 = q1, row 1 = q2
    *, h1,
):
    cd = w1_ref.dtype                          # compute dtype (f32 or bf16)
    s = s_ref[...].astype(cd)                  # (S, TB)
    a = a_ref[...].astype(cd)                  # (A, TB)
    tb = s.shape[1]

    # Bias/padding rows: W1 was augmented with [b1, 0, ..., 0] columns, so a
    # block of ones rows (first one hits b1, the rest hit zero columns) folds
    # the layer-1 bias into the f32 MXU accumulator.
    pad = w1_ref.shape[1] - s.shape[0] - a.shape[0]
    ones = jnp.ones((pad, tb), cd)

    # Sublane-aligned (layout-only) stack: (K_aug, TB).  No wrapper concat.
    x = jnp.concatenate([s, a, ones], axis=0)

    # Fused layer 1 for BOTH critics in one MXU matmul, f32 accumulation.
    z1 = jnp.dot(w1_ref[...], x, preferred_element_type=jnp.float32)  # (2*H1, TB)
    h = jnp.maximum(z1.astype(cd), 0)          # ReLU in compute dtype (bf16 on v6e/v7x)

    def critic_tail(hh, w2_ref, b2_ref, w3_ref, b3_ref):
        z2 = jnp.dot(w2_ref[...], hh, preferred_element_type=jnp.float32)
        h2 = jnp.maximum(z2.astype(cd) + b2_ref[...], 0)               # (H2, TB)
        # out_dim == 1 head as an M=1 MXU matmul: the kernel is VALU-bound,
        # so this is effectively free on the idle MXU slot.
        q = jnp.dot(w3_ref[...], h2, preferred_element_type=jnp.float32)  # (1, TB)
        return q + b3_ref[...]

    q1 = critic_tail(h[:h1, :], w2a_ref, b2a_ref, w3a_ref, b3a_ref)
    q2 = critic_tail(h[h1:, :], w2b_ref, b2b_ref, w3b_ref, b3b_ref)

    # Lane-dense output: (2, TB) with batch on lanes -> unmasked stores.
    out_ref[...] = jnp.concatenate([q1, q2], axis=0)


# ------------------------- One-time parameter prep ---------------------------
def prepare_double_critic_params(params, compute_dtype=jnp.float32):
    """Fuse/augment/cast the PyTorch-layout params once, outside the step."""
    p1, p2 = params["q1"], params["q2"]
    h1 = p1["w1"].shape[0]
    assert p2["w1"].shape == p1["w1"].shape, "both critics must share layer-1 shape"
    assert p2["w2"].shape == p1["w2"].shape, "both critics must share layer-2 shape"

    sa = p1["w1"].shape[1]                      # S + A
    k_aug = ((sa + 1 + 7) // 8) * 8             # room for bias row, sublane aligned
    pad = k_aug - sa
    cd = compute_dtype

    def augment(p):
        # columns: [W1 | b1 | 0 ... 0]  -> pairs with [x | 1 | 1 ... 1] rows.
        return jnp.concatenate(
            [p["w1"], p["b1"].reshape(h1, 1), jnp.zeros((h1, pad - 1), jnp.float32)],
            axis=1)

    w1_aug = jnp.concatenate([augment(p1), augment(p2)], axis=0).astype(cd)

    def tail(p):
        return (p["w2"].astype(cd),
                p["b2"].reshape(-1, 1).astype(cd),
                p["w3"].reshape(1, -1).astype(cd),
                p["b3"].reshape(1, 1).astype(jnp.float32))

    flat = (w1_aug,) + tail(p1) + tail(p2)
    return flat, h1


# ------------------------------ Wrapper --------------------------------------
def _num_tensorcores():
    try:
        kind = jax.devices()[0].device_kind.lower()
        return 2 if "v7" in kind else 1          # v5e / v6e: single TensorCore
    except Exception:
        return 1


def _default_tile_b(B, num_cores):
    # Few, big, lane-aligned tiles: every extra grid step costs ~0.35 us of
    # fixed overhead and buys nothing on a single-TC chip.  On v7x keep exactly
    # one tile per TensorCore.  VMEM never binds at this model size.
    if B % 128 != 0:
        return B                                 # small / odd batch: one tile
    if num_cores >= 2 and B >= 512 and B % (num_cores * 128) == 0:
        tile = B // num_cores
    else:
        tile = B
    while tile > 4096:                           # bound activation footprint
        tile //= 2
    return tile


def double_critic_forward(states, actions, prepared, *, tile_b=None):
    """Forward pass of DoubleCritic: returns (q1, q2), each (B, 1) float32."""
    flat_params, h1 = prepared
    B, S = states.shape
    A = actions.shape[-1]

    if tile_b is None:
        tile_b = _default_tile_b(B, _num_tensorcores())
    assert B % tile_b == 0, "batch must be divisible by the batch tile"
    assert tile_b == B or tile_b % 128 == 0, "tile must be lane-aligned or full batch"

    # Feature-major inputs: batch on the lane axis (tiny transposes, no concat).
    states_t = states.T                          # (S, B)
    actions_t = actions.T                        # (A, B)

    grid = (B // tile_b,)

    def const_spec(p):
        # Whole array, same block every grid step (stays resident in VMEM).
        # TODO(synk): single-buffer via pipeline_mode=pl.Buffered(1) once validated.
        return pl.BlockSpec(p.shape, lambda i: (0, 0))

    in_specs = [
        pl.BlockSpec((S, tile_b), lambda i: (0, i)),
        pl.BlockSpec((A, tile_b), lambda i: (0, i)),
    ] + [const_spec(p) for p in flat_params]

    out_specs = pl.BlockSpec((2, tile_b), lambda i: (0, i))
    out_shape = jax.ShapeDtypeStruct((2, B), jnp.float32)

    q = pl.pallas_call(
        functools.partial(_double_critic_kernel, h1=h1),
        grid=grid,
        in_specs=in_specs,
        out_specs=out_specs,
        out_shape=out_shape,
        compiler_params=pltpu.CompilerParams(
            dimension_semantics=("parallel",),
        ),
    )(states_t, actions_t, *flat_params)

    q = q.T                                      # (B, 2), batch-major again
    return q[:, 0:1], q[:, 1:2]


# ------------------------- Deterministic parameter init ----------------------
def _init_linear(key, fan_in, fan_out):
    # Mirrors torch.nn.Linear default init: U(-1/sqrt(fan_in), 1/sqrt(fan_in)),
    # weights stored in PyTorch (out, in) layout, biases as (out,) vectors.
    kw, kb = jax.random.split(key)
    bound = 1.0 / jnp.sqrt(jnp.float32(fan_in))
    w = jax.random.uniform(kw, (fan_out, fan_in), jnp.float32, -bound, bound)
    b = jax.random.uniform(kb, (fan_out,), jnp.float32, -bound, bound)
    return w, b


def make_double_critic_params(key, state_dim, action_dim, hidden_units=(256, 256)):
    d = state_dim + action_dim
    h1, h2 = hidden_units
    params = {}
    for name in ("q1", "q2"):
        key, k1, k2, k3 = jax.random.split(key, 4)
        w1, b1 = _init_linear(k1, d, h1)
        w2, b2 = _init_linear(k2, h1, h2)
        w3, b3 = _init_linear(k3, h2, 1)
        params[name] = dict(w1=w1, b1=b1, w2=w2, b2=b2, w3=w3, b3=b3)
    return params


# ------------------------------- Reference -----------------------------------
def _reference_forward(states, actions, params):
    x = jnp.concatenate([states, actions], axis=-1)

    def mlp(p):
        h = jnp.maximum(x @ p["w1"].T + p["b1"], 0.0)
        h = jnp.maximum(h @ p["w2"].T + p["b2"], 0.0)
        return h @ p["w3"].T + p["b3"]

    return mlp(params["q1"]), mlp(params["q2"])


# --------------------------------- Main ---------------------------------------
if __name__ == "__main__":
    key = jax.random.PRNGKey(0)
    kp, ks, ka = jax.random.split(key, 3)

    batch = 256
    state_dim = 16
    action_dim = 8
    hidden_units = (256, 256)

    params = make_double_critic_params(kp, state_dim, action_dim, hidden_units)
    states = jax.random.normal(ks, (batch, state_dim), jnp.float32)
    actions = jax.random.normal(ka, (batch, action_dim), jnp.float32)

    # f32 path: tight check against the pure-JAX reference.
    prepared_f32 = prepare_double_critic_params(params, compute_dtype=jnp.float32)
    q1, q2 = double_critic_forward(states, actions, prepared_f32)
    q1, q2 = jax.block_until_ready((q1, q2))

    r1, r2 = _reference_forward(states, actions, params)
    assert q1.shape == (batch, 1) and q2.shape == (batch, 1)
    assert jnp.allclose(q1, r1, atol=1e-4, rtol=1e-4)
    assert jnp.allclose(q2, r2, atol=1e-4, rtol=1e-4)

    # bf16 compute path (preferred on v6e / v7x): f32 MXU accumulation,
    # bf16 elementwise; loose tolerance for bf16 rounding.
    prepared_bf16 = prepare_double_critic_params(params, compute_dtype=jnp.bfloat16)
    q1b, q2b = double_critic_forward(states, actions, prepared_bf16)
    q1b, q2b = jax.block_until_ready((q1b, q2b))
    assert jnp.allclose(q1b, r1, atol=2e-1, rtol=2e-1)
    assert jnp.allclose(q2b, r2, atol=2e-1, rtol=2e-1)

    print("KERNEL_OK")
</pallas_src>

<mosaic_0001>
module attributes {stable_mosaic.version = 11 : i64} {
  func.func @_double_critic_kernel(%arg0: i32, %arg1: memref<16x256xf32, #tpu.memory_space<vmem>>, %arg2: memref<8x256xf32, #tpu.memory_space<vmem>>, %arg3: memref<512x32xf32, #tpu.memory_space<vmem>>, %arg4: memref<256x256xf32, #tpu.memory_space<vmem>>, %arg5: memref<256x1xf32, #tpu.memory_space<vmem>>, %arg6: memref<1x256xf32, #tpu.memory_space<vmem>>, %arg7: memref<1x1xf32, #tpu.memory_space<vmem>>, %arg8: memref<256x256xf32, #tpu.memory_space<vmem>>, %arg9: memref<256x1xf32, #tpu.memory_space<vmem>>, %arg10: memref<1x256xf32, #tpu.memory_space<vmem>>, %arg11: memref<1x1xf32, #tpu.memory_space<vmem>>, %arg12: memref<2x256xf32, #tpu.memory_space<vmem>>) attributes {dimension_semantics = [#tpu.dimension_semantics<parallel>], iteration_bounds = array<i64: 1>, scalar_prefetch = 0 : i64, scratch_operands = 0 : i64, tpu.core_type = #tpu.core_type<tc>, window_params = [{transform_indices = @transform_0, window_bounds = array<i64: 16, 256>}, {transform_indices = @transform_1, window_bounds = array<i64: 8, 256>}, {pipeline_mode = #tpu.pipeline_mode<synchronous>, transform_indices = @transform_2, window_bounds = array<i64: 512, 32>}, {pipeline_mode = #tpu.pipeline_mode<synchronous>, transform_indices = @transform_3, window_bounds = array<i64: 256, 256>}, {pipeline_mode = #tpu.pipeline_mode<synchronous>, transform_indices = @transform_4, window_bounds = array<i64: 256, 1>}, {pipeline_mode = #tpu.pipeline_mode<synchronous>, transform_indices = @transform_5, window_bounds = array<i64: 1, 256>}, {pipeline_mode = #tpu.pipeline_mode<synchronous>, transform_indices = @transform_6, window_bounds = array<i64: 1, 1>}, {pipeline_mode = #tpu.pipeline_mode<synchronous>, transform_indices = @transform_7, window_bounds = array<i64: 256, 256>}, {pipeline_mode = #tpu.pipeline_mode<synchronous>, transform_indices = @transform_8, window_bounds = array<i64: 256, 1>}, {pipeline_mode = #tpu.pipeline_mode<synchronous>, transform_indices = @transform_9, window_bounds = array<i64: 1, 256>}, {pipeline_mode = #tpu.pipeline_mode<synchronous>, transform_indices = @transform_10, window_bounds = array<i64: 1, 1>}, {transform_indices = @transform_11, window_bounds = array<i64: 2, 256>}]} {
    %c0 = arith.constant 0 : index
    %c0_0 = arith.constant 0 : index
    %0 = vector.load %arg1[%c0, %c0_0] : memref<16x256xf32, #tpu.memory_space<vmem>>, vector<16x256xf32>
    %c0_1 = arith.constant 0 : index
    %c0_2 = arith.constant 0 : index
    %1 = vector.load %arg2[%c0_1, %c0_2] : memref<8x256xf32, #tpu.memory_space<vmem>>, vector<8x256xf32>
    %cst = arith.constant 1.000000e+00 : f32
    %2 = vector.broadcast %cst : f32 to vector<8x256xf32>
    %3 = tpu.concatenate %0, %1, %2 in 0 : vector<16x256xf32>, vector<8x256xf32>, vector<8x256xf32> -> vector<32x256xf32>
    %c0_3 = arith.constant 0 : index
    %c0_4 = arith.constant 0 : index
    %4 = vector.load %arg3[%c0_3, %c0_4] : memref<512x32xf32, #tpu.memory_space<vmem>>, vector<512x32xf32>
    %cst_5 = arith.constant dense<0.000000e+00> : vector<512x256xf32>
    %5 = tpu.matmul %4, %3, %cst_5 {dimension_numbers = #tpu.dot_dimension_numbers<[1], [0], [0], [1], [0, 0, 1, 1], [], []>} : vector<512x32xf32>, vector<32x256xf32>, vector<512x256xf32> -> vector<512x256xf32>
    %cst_6 = arith.constant 0.000000e+00 : f32
    %6 = vector.broadcast %cst_6 : f32 to vector<512x256xf32>
    %7 = arith.maximumf %5, %6 : vector<512x256xf32>
    %8 = vector.extract_strided_slice %7 {offsets = [0, 0], sizes = [256, 256], strides = [1, 1]} : vector<512x256xf32> to vector<256x256xf32>
    %c0_7 = arith.constant 0 : index
    %c0_8 = arith.constant 0 : index
    %9 = vector.load %arg4[%c0_7, %c0_8] : memref<256x256xf32, #tpu.memory_space<vmem>>, vector<256x256xf32>
    %cst_9 = arith.constant dense<0.000000e+00> : vector<256x256xf32>
    %10 = tpu.matmul %9, %8, %cst_9 {dimension_numbers = #tpu.dot_dimension_numbers<[1], [0], [0], [1], [0, 0, 1, 1], [], []>} : vector<256x256xf32>, vector<256x256xf32>, vector<256x256xf32> -> vector<256x256xf32>
    %c0_10 = arith.constant 0 : index
    %c0_11 = arith.constant 0 : index
    %11 = vector.load %arg5[%c0_10, %c0_11] : memref<256x1xf32, #tpu.memory_space<vmem>>, vector<256x1xf32>
    %12 = vector.broadcast %11 : vector<256x1xf32> to vector<256x256xf32>
    %13 = arith.addf %10, %12 : vector<256x256xf32>
    %cst_12 = arith.constant 0.000000e+00 : f32
    %14 = vector.broadcast %cst_12 : f32 to vector<256x256xf32>
    %15 = arith.maximumf %13, %14 : vector<256x256xf32>
    %c0_13 = arith.constant 0 : index
    %c0_14 = arith.constant 0 : index
    %16 = vector.load %arg6[%c0_13, %c0_14] : memref<1x256xf32, #tpu.memory_space<vmem>>, vector<1x256xf32>
    %cst_15 = arith.constant dense<0.000000e+00> : vector<1x256xf32>
    %17 = tpu.matmul %16, %15, %cst_15 {dimension_numbers = #tpu.dot_dimension_numbers<[1], [0], [0], [1], [0, 0, 1, 1], [], []>} : vector<1x256xf32>, vector<256x256xf32>, vector<1x256xf32> -> vector<1x256xf32>
    %c0_16 = arith.constant 0 : index
    %c0_17 = arith.constant 0 : index
    %18 = vector.load %arg7[%c0_16, %c0_17] : memref<1x1xf32, #tpu.memory_space<vmem>>, vector<1x1xf32>
    %19 = vector.broadcast %18 : vector<1x1xf32> to vector<1x256xf32>
    %20 = arith.addf %17, %19 : vector<1x256xf32>
    %21 = vector.extract_strided_slice %7 {offsets = [256, 0], sizes = [256, 256], strides = [1, 1]} : vector<512x256xf32> to vector<256x256xf32>
    %c0_18 = arith.constant 0 : index
    %c0_19 = arith.constant 0 : index
    %22 = vector.load %arg8[%c0_18, %c0_19] : memref<256x256xf32, #tpu.memory_space<vmem>>, vector<256x256xf32>
    %cst_20 = arith.constant dense<0.000000e+00> : vector<256x256xf32>
    %23 = tpu.matmul %22, %21, %cst_20 {dimension_numbers = #tpu.dot_dimension_numbers<[1], [0], [0], [1], [0, 0, 1, 1], [], []>} : vector<256x256xf32>, vector<256x256xf32>, vector<256x256xf32> -> vector<256x256xf32>
    %c0_21 = arith.constant 0 : index
    %c0_22 = arith.constant 0 : index
    %24 = vector.load %arg9[%c0_21, %c0_22] : memref<256x1xf32, #tpu.memory_space<vmem>>, vector<256x1xf32>
    %25 = vector.broadcast %24 : vector<256x1xf32> to vector<256x256xf32>
    %26 = arith.addf %23, %25 : vector<256x256xf32>
    %cst_23 = arith.constant 0.000000e+00 : f32
    %27 = vector.broadcast %cst_23 : f32 to vector<256x256xf32>
    %28 = arith.maximumf %26, %27 : vector<256x256xf32>
    %c0_24 = arith.constant 0 : index
    %c0_25 = arith.constant 0 : index
    %29 = vector.load %arg10[%c0_24, %c0_25] : memref<1x256xf32, #tpu.memory_space<vmem>>, vector<1x256xf32>
    %cst_26 = arith.constant dense<0.000000e+00> : vector<1x256xf32>
    %30 = tpu.matmul %29, %28, %cst_26 {dimension_numbers = #tpu.dot_dimension_numbers<[1], [0], [0], [1], [0, 0, 1, 1], [], []>} : vector<1x256xf32>, vector<256x256xf32>, vector<1x256xf32> -> vector<1x256xf32>
    %c0_27 = arith.constant 0 : index
    %c0_28 = arith.constant 0 : index
    %31 = vector.load %arg11[%c0_27, %c0_28] : memref<1x1xf32, #tpu.memory_space<vmem>>, vector<1x1xf32>
    %32 = vector.broadcast %31 : vector<1x1xf32> to vector<1x256xf32>
    %33 = arith.addf %30, %32 : vector<1x256xf32>
    %34 = tpu.concatenate %20, %33 in 0 : vector<1x256xf32>, vector<1x256xf32> -> vector<2x256xf32>
    %c0_29 = arith.constant 0 : index
    %c0_30 = arith.constant 0 : index
    %35 = vector.load %arg12[%c0_29, %c0_30] : memref<2x256xf32, #tpu.memory_space<vmem>>, vector<2x256xf32>
    tpu.vector_store %arg12[%c0_29, %c0_30], %34 {strides = array<i32>} : memref<2x256xf32, #tpu.memory_space<vmem>>, vector<2x256xf32>,
    return
  }
  func.func @transform_0(%arg0: i32) -> (i32, i32) {
    %c0_i32 = arith.constant 0 : i32
    %c0_i32_0 = arith.constant 0 : i32
    return %c0_i32, %arg0 : i32, i32
  }
  func.func @transform_1(%arg0: i32) -> (i32, i32) {
    %c0_i32 = arith.constant 0 : i32
    %c0_i32_0 = arith.constant 0 : i32
    return %c0_i32, %arg0 : i32, i32
  }
  func.func @transform_2(%arg0: i32) -> (i32, i32) {
    %c0_i32 = arith.constant 0 : i32
    %c0_i32_0 = arith.constant 0 : i32
    %c0_i32_1 = arith.constant 0 : i32
    return %c0_i32, %c0_i32_0 : i32, i32
  }
  func.func @transform_3(%arg0: i32) -> (i32, i32) {
    %c0_i32 = arith.constant 0 : i32
    %c0_i32_0 = arith.constant 0 : i32
    %c0_i32_1 = arith.constant 0 : i32
    return %c0_i32, %c0_i32_0 : i32, i32
  }
  func.func @transform_4(%arg0: i32) -> (i32, i32) {
    %c0_i32 = arith.constant 0 : i32
    %c0_i32_0 = arith.constant 0 : i32
    %c0_i32_1 = arith.constant 0 : i32
    return %c0_i32, %c0_i32_0 : i32, i32
  }
  func.func @transform_5(%arg0: i32) -> (i32, i32) {
    %c0_i32 = arith.constant 0 : i32
    %c0_i32_0 = arith.constant 0 : i32
    %c0_i32_1 = arith.constant 0 : i32
    return %c0_i32, %c0_i32_0 : i32, i32
  }
  func.func @transform_6(%arg0: i32) -> (i32, i32) {
    %c0_i32 = arith.constant 0 : i32
    %c0_i32_0 = arith.constant 0 : i32
    %c0_i32_1 = arith.constant 0 : i32
    return %c0_i32, %c0_i32_0 : i32, i32
  }
  func.func @transform_7(%arg0: i32) -> (i32, i32) {
    %c0_i32 = arith.constant 0 : i32
    %c0_i32_0 = arith.constant 0 : i32
    %c0_i32_1 = arith.constant 0 : i32
    return %c0_i32, %c0_i32_0 : i32, i32
  }
  func.func @transform_8(%arg0: i32) -> (i32, i32) {
    %c0_i32 = arith.constant 0 : i32
    %c0_i32_0 = arith.constant 0 : i32
    %c0_i32_1 = arith.constant 0 : i32
    return %c0_i32, %c0_i32_0 : i32, i32
  }
  func.func @transform_9(%arg0: i32) -> (i32, i32) {
    %c0_i32 = arith.constant 0 : i32
    %c0_i32_0 = arith.constant 0 : i32
    %c0_i32_1 = arith.constant 0 : i32
    return %c0_i32, %c0_i32_0 : i32, i32
  }
  func.func @transform_10(%arg0: i32) -> (i32, i32) {
    %c0_i32 = arith.constant 0 : i32
    %c0_i32_0 = arith.constant 0 : i32
    %c0_i32_1 = arith.constant 0 : i32
    return %c0_i32, %c0_i32_0 : i32, i32
  }
  func.func @transform_11(%arg0: i32) -> (i32, i32) {
    %c0_i32 = arith.constant 0 : i32
    %c0_i32_0 = arith.constant 0 : i32
    return %c0_i32, %arg0 : i32, i32
  }
}

</mosaic_0001>

<bundles_post_ra>
// kernel: tpu_custom_call.1
= control target key start
LH: loop header
LB: loop body
LE: loop exit
PB: predicated region body
PF: predicated region fallthrough
CT: control target
= control target key end

     0   :  { %s3953_s0 = inlined_call_operand.hbm [shape: f32[16,256], index: 0, kind: input, shape index: {}]   ;;  %s3954_s1 = inlined_call_operand.hbm [shape: f32[8,256], index: 1, kind: input, shape index: {}]   ;;  %s3955_s2 = inlined_call_operand.vmem [shape: f32[512,32], index: 2, kind: input, shape index: {}]   ;;  %s3956_s3 = inlined_call_operand.vmem [shape: f32[256,256], index: 3, kind: input, shape index: {}]   ;;  %s3957_s4 = inlined_call_operand.vmem [shape: f32[256,1], index: 4, kind: input, shape index: {}]   ;;  %s3958_s5 = inlined_call_operand.vmem [shape: f32[1,256], index: 5, kind: input, shape index: {}]   ;;  %s3959_s6 = inlined_call_operand.<no memory space> [shape: f32[1,1], index: 6, kind: input, shape index: {}]   ;;  %s3960_s7 = inlined_call_operand.vmem [shape: f32[256,256], index: 7, kind: input, shape index: {}]   ;;  %s3961_s8 = inlined_call_operand.vmem [shape: f32[256,1], index: 8, kind: input, shape index: {}]   ;;  %s3962_s9 = inlined_call_operand.vmem [shape: f32[1,256], index: 9, kind: input, shape index: {}]   ;;  %s3963_s11 = inlined_call_operand.hbm [shape: f32[2,256], index: 11, kind: output, shape index: {}]   ;;  %s3964_s10 = inlined_call_operand.<no memory space> [shape: f32[1,1], index: 10, kind: input, shape index: {}]  }
   0x1   :  { %v16_v0 = vstv %s3959_s6  ;;  %v18_v1 = vstv %s3964_s10 }
   0x2   :  { %17 = vst [vmem:[#allocation2] sm:$0x1] %v16_v0  ;;  %19 = vst [vmem:[#allocation3] sm:$0x1] %v18_v1 }
   0x3   :  { %20 = vsyncpa [#allocation5], 0 }
   0x4   :  { %21 = vsyncpa [#allocation8], 0 }
   0x5   :  { %22 = vsyncpa [#allocation6], 0  ;;  %s2729_s21 = smov [#allocation4]   ;;  %s2657_s25 = scalar_lea.hbm %s3953_s0, 512 }
   0x6   :  { %s28_s22 = sshll.u32 %s2729_s21, 4  ;;  %p2658_p0 = scmp.ne.s32.totalorder %s3953_s0, %s2657_s25  ;;  %s29_s22 = int_to_ptr.vmem [resolvable:$true] %s28_s22 }
   0x7   :  { %p2661_p1 = scmp.lt.u32.totalorder %s2657_s25, %s3953_s0 }
   0x9   :  { %p2663_p2 = pnand %p2661_p1, %p2658_p0 }
   0xb   :  { %2666 = shalt.err (!%p2663_p2)
}
   0xc   :  { %s2667_s10 = scalar_lea.vmem %s29_s22, 512  ;;  %p2672_p4 = scmp.lt.s32.totalorder %s29_s22, %s29_s22 }
   0xd   :  { %p2668_p3 = scmp.ne.s32.totalorder %s29_s22, %s2667_s10  ;;  %p2673_p5 = scmp.lt.s32.totalorder %s2667_s10, %s2667_s10 }
   0xf   :  { %p2674_p6 = por %p2673_p5, %p2672_p4 }
  0x11   :  { %p2675_p7 = pnand %p2674_p6, %p2668_p3 }
  0x13   :  { %2678 = shalt.err (!%p2675_p7)
}
  0x14   :  { %s2730_s29 = smov 256   ;;  %s2731_s30 = smov 16  }
  0x15   :  { %34 = dma.hbm_to_vmem [thread:$0]  %s3953_s0, 512, %s29_s22, [#allocation5], %s2730_s29, %s2730_s29, %s2731_s30  }
  0x16   :  { %s2732_s14 = smov [#allocation7]   ;;  %s2679_s18 = scalar_lea.hbm %s3954_s1, 256 }
  0x17   :  { %s41_s15 = sshll.u32 %s2732_s14, 4  ;;  %p2680_p8 = scmp.ne.s32.totalorder %s3954_s1, %s2679_s18  ;;  %s42_s15 = int_to_ptr.vmem [resolvable:$true] %s41_s15 }
  0x18   :  { %p2683_p9 = scmp.lt.u32.totalorder %s2679_s18, %s3954_s1 }
  0x1a   :  { %p2685_p10 = pnand %p2683_p9, %p2680_p8 }
  0x1c   :  { %2688 = shalt.err (!%p2685_p10)
}
  0x1d   :  { %s2689_s24 = scalar_lea.vmem %s42_s15, 256  ;;  %p2694_p12 = scmp.lt.s32.totalorder %s42_s15, %s42_s15 }
  0x1e   :  { %p2690_p11 = scmp.ne.s32.totalorder %s42_s15, %s2689_s24  ;;  %p2695_p13 = scmp.lt.s32.totalorder %s2689_s24, %s2689_s24 }
  0x20   :  { %p2696_p0 = por %p2695_p13, %p2694_p12 }
  0x22   :  { %p2697_p1 = pnand %p2696_p0, %p2690_p11 }
  0x24   :  { %2700 = shalt.err (!%p2697_p1)
}
  0x25   :  { %44 = dma.hbm_to_vmem [thread:$0]  %s3954_s1, 256, %s42_s15, [#allocation8]  }
  0x26   :  { %2723 = dma.done.wait [#allocation5], 512  }
  0x27   :  { %2724 = vsyncadd [#allocation5], 4294966784 }
  0x28   :  { %2725 = dma.done.wait [#allocation8], 256  }
  0x29   :  { %2726 = vsyncadd [#allocation8], 4294967040  ;;  %v2733_v2 = vmov 0.0   ;;  %v70_v3 = vld [vmem:[#allocation4 + $0x8] sm:$0xff]  ;;  %v72_v4 = vld [vmem:[#allocation4 + $0x18] sm:$0xff]  ;;  %v2734_v11 = vmov 1.0  }
  0x2a   :  { %396 = vmatprep.mubr.f32.mxu0 %v2733_v2  ;;  %v69_v5 = vld [vmem:[#allocation4] sm:$0xff]  ;;  %v2351_v6 = vpack.c.bf16 %v72_v4, %v70_v3  ;;  %v71_v7 = vld [vmem:[#allocation4 + $0x10] sm:$0xff]  ;;  %v74_v8 = vld [vmem:[#allocation7 + $0x8] sm:$0xff]  ;;  %vm139_vm0 = vcmask 261120   ;;  %v2735_v3 = vmov 0   ;;  %vm2255_vm1 = vcmask 1040384  }
  0x2b   :  { %v73_v9 = vld [vmem:[#allocation7] sm:$0xff]  ;;  %v2353_v10 = vpack.c.bf16 %v71_v7, %v69_v5  ;;  %v2355_v12 = vpack.c.bf16 %v2734_v11, %v74_v8  ;;  %v77_v16 = vld [vmem:[%s3955_s2 + $0x10] sm:$0xff]  ;;  %v78_v17 = vld [vmem:[%s3955_s2 + $0x18] sm:$0xff]  ;;  %2655 = vset.pattern.permute.xlu0 %v2735_v3  ;;  %2656 = vset.pattern.permute.xlu1 %v2735_v3 }
  0x2c   :  { %2352 = vmatprep.subr.bf16.mxu0 %v2351_v6  ;;  %v2357_v13 = vpack.c.bf16 %v2734_v11, %v73_v9  ;;  %v75_v14 = vld [vmem:[%s3955_s2] sm:$0xff]  ;;  %v76_v15 = vld [vmem:[%s3955_s2 + $0x8] sm:$0xff]  ;;  %v81_v20 = vld [vmem:[%s3955_s2 + $0x30] sm:$0xff] }
  0x2d   :  { %2354 = vmatpush1.bf16.msra.mxu0 %v2353_v10  ;;  %v79_v18 = vld [vmem:[%s3955_s2 + $0x20] sm:$0xff]  ;;  %v80_v19 = vld [vmem:[%s3955_s2 + $0x28] sm:$0xff]  ;;  %v82_v21 = vld [vmem:[%s3955_s2 + $0x38] sm:$0xff] }
  0x2e   :  { %2356 = vmatprep.subr.bf16.mxu0 %v2355_v12  ;;  %v83_v22 = vld [vmem:[%s3955_s2 + $0x40] sm:$0xff]  ;;  %v84_v23 = vld [vmem:[%s3955_s2 + $0x48] sm:$0xff]  ;;  %v85_v24 = vld [vmem:[%s3955_s2 + $0x50] sm:$0xff] }
  0x2f   :  { %v86_v25 = vld [vmem:[%s3955_s2 + $0x58] sm:$0xff]  ;;  %v87_v26 = vld [vmem:[%s3955_s2 + $0x60] sm:$0xff]  ;;  %v88_v27 = vld [vmem:[%s3955_s2 + $0x68] sm:$0xff] }
  0x30   :  { %v89_v28 = vld [vmem:[%s3955_s2 + $0x70] sm:$0xff]  ;;  %v90_v29 = vld [vmem:[%s3955_s2 + $0x78] sm:$0xff]  ;;  %v91_v30 = vld [vmem:[%s3955_s2 + $0x80] sm:$0xff] }
  0x31   :  { %2358 = vmatpush1.bf16.msra.mxu0 %v2357_v13  ;;  %v92_v31 = vld [vmem:[%s3955_s2 + $0x88] sm:$0xff]  ;;  %v93_v32 = vld [vmem:[%s3955_s2 + $0x90] sm:$0xff]  ;;  %v94_v33 = vld [vmem:[%s3955_s2 + $0x98] sm:$0xff] }
  0x32   :  { %v95_v34 = vld [vmem:[%s3955_s2 + $0xa0] sm:$0xff]  ;;  %v96_v35 = vld [vmem:[%s3955_s2 + $0xa8] sm:$0xff]  ;;  %v97_v36 = vld [vmem:[%s3955_s2 + $0xb0] sm:$0xff] }
  0x33   :  { %v98_v37 = vld [vmem:[%s3955_s2 + $0xb8] sm:$0xff]  ;;  %v99_v38 = vld [vmem:[%s3955_s2 + $0xc0] sm:$0xff]  ;;  %v100_v39 = vld [vmem:[%s3955_s2 + $0xc8] sm:$0xff] }
  0x34   :  { %2286 = vmatmul.mubr.msk.f32.vlgmr.msra.gmra.mrb[0].mxu0 %vm139_vm0, %v75_v14  ;;  %v101_v40 = vld [vmem:[%s3955_s2 + $0xd0] sm:$0xff]  ;;  %v102_v41 = vld [vmem:[%s3955_s2 + $0xd8] sm:$0xff]  ;;  %v103_v42 = vld [vmem:[%s3955_s2 + $0xe0] sm:$0xff] }
  0x35   :  { %402 = vmatprep.mubr.f32.mxu0 %v2733_v2  ;;  %v104_v43 = vld [vmem:[%s3955_s2 + $0xe8] sm:$0xff]  ;;  %v105_v44 = vld [vmem:[%s3955_s2 + $0xf0] sm:$0xff]  ;;  %v106_v45 = vld [vmem:[%s3955_s2 + $0xf8] sm:$0xff] }
  0x36   :  { %v107_v46 = vld [vmem:[%s3955_s2 + $0x100] sm:$0xff]  ;;  %v108_v47 = vld [vmem:[%s3955_s2 + $0x108] sm:$0xff]  ;;  %v109_v48 = vld [vmem:[%s3955_s2 + $0x110] sm:$0xff] }
  0x37   :  { %v110_v49 = vld [vmem:[%s3955_s2 + $0x118] sm:$0xff]  ;;  %v111_v50 = vld [vmem:[%s3955_s2 + $0x120] sm:$0xff]  ;;  %v112_v51 = vld [vmem:[%s3955_s2 + $0x128] sm:$0xff] }
  0x38   :  { %2287 = vmatmul.mubr.msk.f32.gmra.mrb[2].mxu0 %vm139_vm0, %v76_v15  ;;  %v113_v52 = vld [vmem:[%s3955_s2 + $0x130] sm:$0xff]  ;;  %v114_v53 = vld [vmem:[%s3955_s2 + $0x138] sm:$0xff]  ;;  %v115_v54 = vld [vmem:[%s3955_s2 + $0x140] sm:$0xff] }
  0x39   :  { %408 = vmatprep.mubr.f32.mxu0 %v2733_v2  ;;  %v116_v55 = vld [vmem:[%s3955_s2 + $0x148] sm:$0xff]  ;;  %v117_v56 = vld [vmem:[%s3955_s2 + $0x150] sm:$0xff]  ;;  %v118_v57 = vld [vmem:[%s3955_s2 + $0x158] sm:$0xff] }
  0x3a   :  { %v119_v58 = vld [vmem:[%s3955_s2 + $0x160] sm:$0xff]  ;;  %v120_v59 = vld [vmem:[%s3955_s2 + $0x168] sm:$0xff]  ;;  %v121_v60 = vld [vmem:[%s3955_s2 + $0x170] sm:$0xff] }
  0x3b   :  { %v122_v61 = vld [vmem:[%s3955_s2 + $0x178] sm:$0xff]  ;;  %v123_v62 = vld [vmem:[%s3955_s2 + $0x180] sm:$0xff]  ;;  %v124_v63 = vld [vmem:[%s3955_s2 + $0x188] sm:$0xff] }
  0x3c   :  { %2288 = vmatmul.mubr.msk.f32.gmra.mrb[4].mxu0 %vm139_vm0, %v77_v16  ;;  %v125_v0 = vld [vmem:[%s3955_s2 + $0x190] sm:$0xff]  ;;  %v126_v1 = vld [vmem:[%s3955_s2 + $0x198] sm:$0xff]  ;;  %v973_v4 = vld [vmem:[%s3957_s4] sm:$0xff] }
  0x3d   :  { %414 = vmatprep.mubr.f32.mxu0 %v2733_v2  ;;  %1007 = vperm.xlu0 %2655, %v973_v4   ;;  %v127_v5 = vld [vmem:[%s3955_s2 + $0x1a0] sm:$0xff]  ;;  %v975_v6 = vld [vmem:[%s3957_s4 + $0x10] sm:$0xff]  ;;  %v974_v7 = vld [vmem:[%s3957_s4 + $0x8] sm:$0xff] }
  0x3e   :  { %1017 = vperm.xlu1 %2656, %v975_v6   ;;  %v128_v8 = vld [vmem:[%s3955_s2 + $0x1a8] sm:$0xff]  ;;  %v976_v9 = vld [vmem:[%s3957_s4 + $0x18] sm:$0xff]  ;;  %v977_v10 = vld [vmem:[%s3957_s4 + $0x20] sm:$0xff] }
  0x3f   :  { %v129_v13 = vld [vmem:[%s3955_s2 + $0x1b0] sm:$0xff]  ;;  %v978_v14 = vld [vmem:[%s3957_s4 + $0x28] sm:$0xff] }
  0x40   :  { %2289 = vmatmul.mubr.msk.f32.gmra.mrb[6].mxu0 %vm139_vm0, %v78_v17  ;;  %v979_v15 = vld [vmem:[%s3957_s4 + $0x30] sm:$0xff]  ;;  %v942_v17 = vld [vmem:[%s3956_s3 + $0x108] sm:$0xff] }
  0x41   :  { %420 = vmatprep.mubr.f32.mxu0 %v2733_v2  ;;  %1012 = vperm.xlu0 %2655, %v974_v7  }
  0x42   :  { %1022 = vperm.xlu1 %2656, %v976_v9   ;;  %1325 = vmatprep.mubr.f32.mxu1 %v942_v17  ;;  %v992_v9 = vld [vmem:[%s3957_s4 + $0x98] sm:$0xff]  ;;  %v995_v17 = vld [vmem:[%s3957_s4 + $0xb0] sm:$0xff] }
  0x44   :  { %2290 = vmatmul.mubr.msk.f32.gmra.mrb[8].mxu0 %vm139_vm0, %v79_v18 }
  0x45   :  { %426 = vmatprep.mubr.f32.mxu0 %v2733_v2  ;;  %1027 = vperm.xlu0 %2655, %v977_v10   ;;  %v993_v10 = vld [vmem:[%s3957_s4 + $0xa0] sm:$0xff] }
  0x46   :  { %1032 = vperm.xlu1 %2656, %v978_v14  }
  0x48   :  { %2291 = vmatmul.mubr.msk.f32.gmra.mrb[10].mxu0 %vm139_vm0, %v80_v19 }
  0x49   :  { %432 = vmatprep.mubr.f32.mxu0 %v2733_v2  ;;  %1037 = vperm.xlu0 %2655, %v979_v15   ;;  %v137_v15 = vld [vmem:[%s3955_s2 + $0x1f0] sm:$0xff] }
  0x4c   :  { %2292 = vmatmul.mubr.msk.f32.gmra.mrb[12].mxu0 %vm139_vm0, %v81_v20 }
  0x4d   :  { %438 = vmatprep.mubr.f32.mxu0 %v2733_v2 }
  0x50   :  { %2293 = vmatmul.mubr.msk.f32.gmra.mrb[14].mxu0 %vm139_vm0, %v82_v21 }
  0x51   :  { %444 = vmatprep.mubr.f32.mxu0 %v2733_v2 }
  0x54   :  { %2294 = vmatmul.mubr.msk.f32.gmra.mrb[16].mxu0 %vm139_vm0, %v83_v22 }
  0x55   :  { %450 = vmatprep.mubr.f32.mxu0 %v2733_v2 }
  0x58   :  { %2295 = vmatmul.mubr.msk.f32.gmra.mrb[18].mxu0 %vm139_vm0, %v84_v23  ;;  %v130_v23 = vld [vmem:[%s3955_s2 + $0x1b8] sm:$0xff] }
  0x59   :  { %456 = vmatprep.mubr.f32.mxu0 %v2733_v2 }
  0x5c   :  { %2296 = vmatmul.mubr.msk.f32.gmra.mrb[20].mxu0 %vm139_vm0, %v85_v24  ;;  %v980_v24 = vld [vmem:[%s3957_s4 + $0x38] sm:$0xff] }
  0x5d   :  { %462 = vmatprep.mubr.f32.mxu0 %v2733_v2  ;;  %1042 = vperm.xlu1 %2656, %v980_v24   ;;  %v138_v24 = vld [vmem:[%s3955_s2 + $0x1f8] sm:$0xff] }
  0x60   :  { %2297 = vmatmul.mubr.msk.f32.gmra.mrb[22].mxu0 %vm139_vm0, %v86_v25  ;;  %v981_v25 = vld [vmem:[%s3957_s4 + $0x40] sm:$0xff] }
  0x61   :  { %468 = vmatprep.mubr.f32.mxu0 %v2733_v2  ;;  %1047 = vperm.xlu0 %2655, %v981_v25   ;;  %v996_v25 = vld [vmem:[%s3957_s4 + $0xb8] sm:$0xff] }
  0x64   :  { %2298 = vmatmul.mubr.msk.f32.gmra.mrb[24].mxu0 %vm139_vm0, %v87_v26 }
  0x65   :  { %474 = vmatprep.mubr.f32.mxu0 %v2733_v2 }
  0x68   :  { %2299 = vmatmul.mubr.msk.f32.gmra.mrb[26].mxu0 %vm139_vm0, %v88_v27 }
  0x69   :  { %480 = vmatprep.mubr.f32.mxu0 %v2733_v2 }
  0x6c   :  { %2300 = vmatmul.mubr.msk.f32.gmra.mrb[28].mxu0 %vm139_vm0, %v89_v28 }
  0x6d   :  { %486 = vmatprep.mubr.f32.mxu0 %v2733_v2 }
  0x70   :  { %2301 = vmatmul.mubr.msk.f32.gmra.mrb[30].mxu0 %vm139_vm0, %v90_v29 }
  0x71   :  { %492 = vmatprep.mubr.f32.mxu0 %v2733_v2 }
  0x74   :  { %2302 = vmatmul.mubr.msk.f32.gmra.mrb[32].mxu0 %vm139_vm0, %v91_v30  ;;  %v131_v30 = vld [vmem:[%s3955_s2 + $0x1c0] sm:$0xff] }
  0x75   :  { %498 = vmatprep.mubr.f32.mxu0 %v2733_v2 }
  0x78   :  { %2303 = vmatmul.mubr.msk.f32.gmra.mrb[34].mxu0 %vm139_vm0, %v92_v31  ;;  %v982_v31 = vld [vmem:[%s3957_s4 + $0x48] sm:$0xff] }
  0x79   :  { %504 = vmatprep.mubr.f32.mxu0 %v2733_v2  ;;  %1052 = vperm.xlu1 %2656, %v982_v31   ;;  %v998_v31 = vld [vmem:[%s3957_s4 + $0xc8] sm:$0xff] }
  0x7c   :  { %2304 = vmatmul.mubr.msk.f32.gmra.mrb[36].mxu0 %vm139_vm0, %v93_v32  ;;  %v983_v32 = vld [vmem:[%s3957_s4 + $0x50] sm:$0xff] }
  0x7d   :  { %510 = vmatprep.mubr.f32.mxu0 %v2733_v2  ;;  %1057 = vperm.xlu0 %2655, %v983_v32   ;;  %v999_v32 = vld [vmem:[%s3957_s4 + $0xd0] sm:$0xff] }
  0x80   :  { %2305 = vmatmul.mubr.msk.f32.gmra.mrb[38].mxu0 %vm139_vm0, %v94_v33 }
  0x81   :  { %516 = vmatprep.mubr.f32.mxu0 %v2733_v2 }
  0x84   :  { %2306 = vmatmul.mubr.msk.f32.gmra.mrb[40].mxu0 %vm139_vm0, %v95_v34 }
  0x85   :  { %522 = vmatprep.mubr.f32.mxu0 %v2733_v2 }
  0x88   :  { %2307 = vmatmul.mubr.msk.f32.gmra.mrb[42].mxu0 %vm139_vm0, %v96_v35 }
  0x89   :  { %528 = vmatprep.mubr.f32.mxu0 %v2733_v2 }
  0x8c   :  { %2308 = vmatmul.mubr.msk.f32.gmra.mrb[44].mxu0 %vm139_vm0, %v97_v36 }
  0x8d   :  { %534 = vmatprep.mubr.f32.mxu0 %v2733_v2 }
  0x90   :  { %2309 = vmatmul.mubr.msk.f32.gmra.mrb[46].mxu0 %vm139_vm0, %v98_v37 }
  0x91   :  { %540 = vmatprep.mubr.f32.mxu0 %v2733_v2 }
  0x94   :  { %2310 = vmatmul.mubr.msk.f32.gmra.mrb[48].mxu0 %vm139_vm0, %v99_v38 }
  0x95   :  { %546 = vmatprep.mubr.f32.mxu0 %v2733_v2 }
  0x98   :  { %2311 = vmatmul.mubr.msk.f32.gmra.mrb[50].mxu0 %vm139_vm0, %v100_v39  ;;  %v132_v39 = vld [vmem:[%s3955_s2 + $0x1c8] sm:$0xff] }
  0x99   :  { %552 = vmatprep.mubr.f32.mxu0 %v2733_v2 }
  0x9c   :  { %2312 = vmatmul.mubr.msk.f32.gmra.mrb[52].mxu0 %vm139_vm0, %v101_v40  ;;  %v984_v40 = vld [vmem:[%s3957_s4 + $0x58] sm:$0xff] }
  0x9d   :  { %558 = vmatprep.mubr.f32.mxu0 %v2733_v2  ;;  %1062 = vperm.xlu1 %2656, %v984_v40   ;;  %v1001_v40 = vld [vmem:[%s3957_s4 + $0xe0] sm:$0xff] }
  0xa0   :  { %2313 = vmatmul.mubr.msk.f32.gmra.mrb[54].mxu0 %vm139_vm0, %v102_v41  ;;  %v985_v41 = vld [vmem:[%s3957_s4 + $0x60] sm:$0xff] }
  0xa1   :  { %564 = vmatprep.mubr.f32.mxu0 %v2733_v2  ;;  %1067 = vperm.xlu0 %2655, %v985_v41  }
  0xa4   :  { %2314 = vmatmul.mubr.msk.f32.gmra.mrb[56].mxu0 %vm139_vm0, %v103_v42 }
  0xa5   :  { %570 = vmatprep.mubr.f32.mxu0 %v2733_v2 }
  0xa8   :  { %2315 = vmatmul.mubr.msk.f32.gmra.mrb[58].mxu0 %vm139_vm0, %v104_v43 }
  0xa9   :  { %576 = vmatprep.mubr.f32.mxu0 %v2733_v2 }
  0xac   :  { %2316 = vmatmul.mubr.msk.f32.gmra.mrb[60].mxu0 %vm139_vm0, %v105_v44 }
  0xad   :  { %582 = vmatprep.mubr.f32.mxu0 %v2733_v2 }
  0xb0   :  { %2317 = vmatmul.mubr.msk.f32.gmra.mrb[62].mxu0 %vm139_vm0, %v106_v45 }
  0xb1   :  { %588 = vmatprep.mubr.f32.mxu0 %v2733_v2 }
  0xb4   :  { %2318 = vmatmul.mubr.msk.f32.gmra.mrb[64].mxu0 %vm139_vm0, %v107_v46  ;;  %v133_v46 = vld [vmem:[%s3955_s2 + $0x1d0] sm:$0xff] }
  0xb5   :  { %594 = vmatprep.mubr.f32.mxu0 %v2733_v2 }
  0xb8   :  { %2319 = vmatmul.mubr.msk.f32.gmra.mrb[66].mxu0 %vm139_vm0, %v108_v47  ;;  %v986_v47 = vld [vmem:[%s3957_s4 + $0x68] sm:$0xff] }
  0xb9   :  { %600 = vmatprep.mubr.f32.mxu0 %v2733_v2  ;;  %1072 = vperm.xlu1 %2656, %v986_v47  }
  0xbc   :  { %2320 = vmatmul.mubr.msk.f32.gmra.mrb[68].mxu0 %vm139_vm0, %v109_v48  ;;  %v987_v48 = vld [vmem:[%s3957_s4 + $0x70] sm:$0xff] }
  0xbd   :  { %606 = vmatprep.mubr.f32.mxu0 %v2733_v2  ;;  %1077 = vperm.xlu0 %2655, %v987_v48  }
  0xc0   :  { %2321 = vmatmul.mubr.msk.f32.gmra.mrb[70].mxu0 %vm139_vm0, %v110_v49 }
  0xc1   :  { %612 = vmatprep.mubr.f32.mxu0 %v2733_v2 }
  0xc4   :  { %2322 = vmatmul.mubr.msk.f32.gmra.mrb[72].mxu0 %vm139_vm0, %v111_v50 }
  0xc5   :  { %618 = vmatprep.mubr.f32.mxu0 %v2733_v2 }
  0xc8   :  { %2323 = vmatmul.mubr.msk.f32.gmra.mrb[74].mxu0 %vm139_vm0, %v112_v51 }
  0xc9   :  { %624 = vmatprep.mubr.f32.mxu0 %v2733_v2 }
  0xcc   :  { %2324 = vmatmul.mubr.msk.f32.gmra.mrb[76].mxu0 %vm139_vm0, %v113_v52 }
  0xcd   :  { %630 = vmatprep.mubr.f32.mxu0 %v2733_v2 }
  0xd0   :  { %2325 = vmatmul.mubr.msk.f32.gmra.mrb[78].mxu0 %vm139_vm0, %v114_v53 }
  0xd1   :  { %636 = vmatprep.mubr.f32.mxu0 %v2733_v2 }
  0xd4   :  { %2326 = vmatmul.mubr.msk.f32.gmra.mrb[80].mxu0 %vm139_vm0, %v115_v54 }
  0xd5   :  { %642 = vmatprep.mubr.f32.mxu0 %v2733_v2 }
  0xd8   :  { %2327 = vmatmul.mubr.msk.f32.gmra.mrb[82].mxu0 %vm139_vm0, %v116_v55  ;;  %v134_v55 = vld [vmem:[%s3955_s2 + $0x1d8] sm:$0xff] }
  0xd9   :  { %648 = vmatprep.mubr.f32.mxu0 %v2733_v2 }
  0xdc   :  { %2328 = vmatmul.mubr.msk.f32.gmra.mrb[84].mxu0 %vm139_vm0, %v117_v56  ;;  %v988_v56 = vld [vmem:[%s3957_s4 + $0x78] sm:$0xff] }
  0xdd   :  { %654 = vmatprep.mubr.f32.mxu0 %v2733_v2  ;;  %1082 = vperm.xlu1 %2656, %v988_v56  }
  0xe0   :  { %2329 = vmatmul.mubr.msk.f32.gmra.mrb[86].mxu0 %vm139_vm0, %v118_v57  ;;  %v989_v57 = vld [vmem:[%s3957_s4 + $0x80] sm:$0xff] }
  0xe1   :  { %660 = vmatprep.mubr.f32.mxu0 %v2733_v2  ;;  %1087 = vperm.xlu0 %2655, %v989_v57  }
  0xe4   :  { %2330 = vmatmul.mubr.msk.f32.gmra.mrb[88].mxu0 %vm139_vm0, %v119_v58 }
  0xe5   :  { %666 = vmatprep.mubr.f32.mxu0 %v2733_v2 }
  0xe8   :  { %2331 = vmatmul.mubr.msk.f32.gmra.mrb[90].mxu0 %vm139_vm0, %v120_v59 }
  0xe9   :  { %672 = vmatprep.mubr.f32.mxu0 %v2733_v2 }
  0xec   :  { %2332 = vmatmul.mubr.msk.f32.gmra.mrb[92].mxu0 %vm139_vm0, %v121_v60 }
  0xed   :  { %678 = vmatprep.mubr.f32.mxu0 %v2733_v2 }
  0xf0   :  { %2333 = vmatmul.mubr.msk.f32.gmra.mrb[94].mxu0 %vm139_vm0, %v122_v61 }
  0xf1   :  { %684 = vmatprep.mubr.f32.mxu0 %v2733_v2 }
  0xf4   :  { %2334 = vmatmul.mubr.msk.f32.gmra.mrb[96].mxu0 %vm139_vm0, %v123_v62  ;;  %v135_v62 = vld [vmem:[%s3955_s2 + $0x1e0] sm:$0xff] }
  0xf5   :  { %690 = vmatprep.mubr.f32.mxu0 %v2733_v2 }
  0xf8   :  { %2335 = vmatmul.mubr.msk.f32.gmra.mrb[98].mxu0 %vm139_vm0, %v124_v63  ;;  %v990_v63 = vld [vmem:[%s3957_s4 + $0x88] sm:$0xff] }
  0xf9   :  { %696 = vmatprep.mubr.f32.mxu0 %v2733_v2  ;;  %1092 = vperm.xlu1 %2656, %v990_v63  }
  0xfc   :  { %2336 = vmatmul.mubr.msk.f32.gmra.mrb[100].mxu0 %vm139_vm0, %v125_v0  ;;  %v991_v0 = vld [vmem:[%s3957_s4 + $0x90] sm:$0xff] }
  0xfd   :  { %702 = vmatprep.mubr.f32.mxu0 %v2733_v2  ;;  %1097 = vperm.xlu0 %2655, %v991_v0  }
  0xfe   :  { %1102 = vperm.xlu1 %2656, %v992_v9  }
 0x100   :  { %2337 = vmatmul.mubr.msk.f32.gmra.mrb[102].mxu0 %vm139_vm0, %v126_v1 }
 0x101   :  { %708 = vmatprep.mubr.f32.mxu0 %v2733_v2  ;;  %1107 = vperm.xlu0 %2655, %v993_v10   ;;  %v1648_v10 = vld [vmem:[%s3961_s8 + $0x28] sm:$0xff] }
 0x104   :  { %2338 = vmatmul.mubr.msk.f32.gmra.mrb[104].mxu0 %vm139_vm0, %v127_v5 }
 0x105   :  { %714 = vmatprep.mubr.f32.mxu0 %v2733_v2  ;;  %1117 = vperm.xlu0 %2655, %v995_v17  }
 0x107   :  { %v398_v11 = vpop.f32.mrb[0].mxu0 }
 0x108   :  { %v400_v12 = vpop.f32.mrb[1].mxu0  ;;  %2339 = vmatmul.mubr.msk.f32.gmra.mrb[106].mxu0 %vm139_vm0, %v128_v8  ;;  %v781_v18 = vmax.f32 %v398_v11, 0.0  ;;  %v136_v8 = vld [vmem:[%s3955_s2 + $0x1e8] sm:$0xff] }
 0x109   :  { %720 = vmatprep.mubr.f32.mxu0 %v2733_v2  ;;  %v782_v21 = vmax.f32 %v400_v12, 0.0 }
 0x10b   :  { %v404_v16 = vpop.f32.mrb[2].mxu0 }
 0x10c   :  { %v783_v19 = vmax.f32 %v404_v16, 0.0  ;;  %v406_v20 = vpop.f32.mrb[3].mxu0  ;;  %2340 = vmatmul.mubr.msk.f32.gmra.mrb[108].mxu0 %vm139_vm0, %v129_v13  ;;  %v994_v16 = vld [vmem:[%s3957_s4 + $0xa8] sm:$0xff] }
 0x10d   :  { %v784_v22 = vmax.f32 %v406_v20, 0.0  ;;  %726 = vmatprep.mubr.f32.mxu0 %v2733_v2  ;;  %1112 = vperm.xlu1 %2656, %v994_v16   ;;  %v1650_v16 = vld [vmem:[%s3961_s8 + $0x38] sm:$0xff] }
 0x10e   :  { %v2361_v26 = vpack.c.bf16 %v783_v19, %v781_v18 }
 0x10f   :  { %v2359_v27 = vpack.c.bf16 %v784_v22, %v782_v21  ;;  %v410_v28 = vpop.f32.mrb[4].mxu0 }
 0x110   :  { %v412_v29 = vpop.f32.mrb[5].mxu0  ;;  %2341 = vmatmul.mubr.msk.f32.gmra.mrb[110].mxu0 %vm139_vm0, %v130_v23  ;;  %v785_v34 = vmax.f32 %v410_v28, 0.0 }
 0x111   :  { %2360 = vmatprep.subr.bf16.mxu0 %v2359_v27  ;;  %2615 = vmatprep.subr.bf16.mxu1 %v2359_v27  ;;  %v786_v37 = vmax.f32 %v412_v29, 0.0 }
 0x112   :  { %2362 = vmatpush1.bf16.msra.mxu0 %v2361_v26  ;;  %2631 = vmatpush1.bf16.msra.mxu1 %v2361_v26  ;;  %v997_v26 = vld [vmem:[%s3957_s4 + $0xc0] sm:$0xff] }
 0x113   :  { %v416_v33 = vpop.f32.mrb[6].mxu0  ;;  %732 = vmatprep.mubr.f32.mxu0 %v2733_v2  ;;  %1122 = vperm.xlu1 %2656, %v996_v25   ;;  %v1653_v25 = vld [vmem:[%s3961_s8 + $0x50] sm:$0xff] }
 0x114   :  { %v787_v35 = vmax.f32 %v416_v33, 0.0  ;;  %v418_v36 = vpop.f32.mrb[7].mxu0  ;;  %2342 = vmatmul.mubr.msk.f32.gmra.mrb[112].mxu0 %vm139_vm0, %v131_v30  ;;  %1127 = vperm.xlu0 %2655, %v997_v26  }
 0x115   :  { %v788_v38 = vmax.f32 %v418_v36, 0.0  ;;  %738 = vmatprep.mubr.f32.mxu0 %v2733_v2 }
 0x116   :  { %v2365_v42 = vpack.c.bf16 %v787_v35, %v785_v34 }
 0x117   :  { %v2363_v43 = vpack.c.bf16 %v788_v38, %v786_v37  ;;  %v422_v44 = vpop.f32.mrb[8].mxu0  ;;  %1132 = vperm.xlu1 %2656, %v998_v31  }
 0x118   :  { %v424_v45 = vpop.f32.mrb[9].mxu0  ;;  %2343 = vmatmul.mubr.msk.f32.gmra.mrb[114].mxu0 %vm139_vm0, %v132_v39  ;;  %v789_v50 = vmax.f32 %v422_v44, 0.0  ;;  %1137 = vperm.xlu0 %2655, %v999_v32   ;;  %v1000_v39 = vld [vmem:[%s3957_s4 + $0xd8] sm:$0xff]  ;;  %v1655_v32 = vld [vmem:[%s3961_s8 + $0x60] sm:$0xff] }
 0x119   :  { %2364 = vmatprep.subr.bf16.mxu0 %v2363_v43  ;;  %2616 = vmatprep.subr.bf16.mxu1 %v2363_v43  ;;  %v790_v53 = vmax.f32 %v424_v45, 0.0  ;;  %v1002_v45 = vld [vmem:[%s3957_s4 + $0xe8] sm:$0xff] }
 0x11a   :  { %2366 = vmatpush1.bf16.msra.mxu0 %v2365_v42  ;;  %2632 = vmatpush1.bf16.msra.mxu1 %v2365_v42 }
 0x11b   :  { %v428_v49 = vpop.f32.mrb[10].mxu0  ;;  %744 = vmatprep.mubr.f32.mxu0 %v2733_v2  ;;  %1142 = vperm.xlu1 %2656, %v1000_v39  }
 0x11c   :  { %v791_v51 = vmax.f32 %v428_v49, 0.0  ;;  %v430_v52 = vpop.f32.mrb[11].mxu0  ;;  %2344 = vmatmul.mubr.msk.f32.gmra.mrb[116].mxu0 %vm139_vm0, %v133_v46  ;;  %1147 = vperm.xlu0 %2655, %v1001_v40   ;;  %v1003_v46 = vld [vmem:[%s3957_s4 + $0xf0] sm:$0xff] }
 0x11d   :  { %v792_v54 = vmax.f32 %v430_v52, 0.0  ;;  %750 = vmatprep.mubr.f32.mxu0 %v2733_v2 }
 0x11e   :  { %v2369_v58 = vpack.c.bf16 %v791_v51, %v789_v50 }
 0x11f   :  { %v2367_v59 = vpack.c.bf16 %v792_v54, %v790_v53  ;;  %v434_v60 = vpop.f32.mrb[12].mxu0  ;;  %1152 = vperm.xlu1 %2656, %v1002_v45   ;;  %v1004_v53 = vld [vmem:[%s3957_s4 + $0xf8] sm:$0xff]  ;;  %v1643_v54 = vld [vmem:[%s3961_s8] sm:$0xff] }
 0x120   :  { %v436_v61 = vpop.f32.mrb[13].mxu0  ;;  %2345 = vmatmul.mubr.msk.f32.gmra.mrb[118].mxu0 %vm139_vm0, %v134_v55  ;;  %v793_v3 = vmax.f32 %v434_v60, 0.0  ;;  %1157 = vperm.xlu0 %2655, %v1003_v46   ;;  %v1645_v60 = vld [vmem:[%s3961_s8 + $0x10] sm:$0xff]  ;;  %v1659_v46 = vld [vmem:[%s3961_s8 + $0x80] sm:$0xff] }
 0x121   :  { %2368 = vmatprep.subr.bf16.mxu0 %v2367_v59  ;;  %2617 = vmatprep.subr.bf16.mxu1 %v2367_v59  ;;  %v794_v6 = vmax.f32 %v436_v61, 0.0  ;;  %v1644_v59 = vld [vmem:[%s3961_s8 + $0x8] sm:$0xff] }
 0x122   :  { %2370 = vmatpush1.bf16.msra.mxu0 %v2369_v58  ;;  %2633 = vmatpush1.bf16.msra.mxu1 %v2369_v58 }
 0x123   :  { %v440_v1 = vpop.f32.mrb[14].mxu0  ;;  %756 = vmatprep.mubr.f32.mxu0 %v2733_v2  ;;  %1162 = vperm.xlu1 %2656, %v1004_v53  }
 0x124   :  { %v795_v4 = vmax.f32 %v440_v1, 0.0  ;;  %v442_v5 = vpop.f32.mrb[15].mxu0  ;;  %2346 = vmatmul.mubr.msk.f32.gmra.mrb[120].mxu0 %vm139_vm0, %v135_v62  ;;  %1677 = vperm.xlu0 %2655, %v1643_v54  }
 0x125   :  { %v796_v7 = vmax.f32 %v442_v5, 0.0  ;;  %762 = vmatprep.mubr.f32.mxu0 %v2733_v2  ;;  %v1647_v5 = vld [vmem:[%s3961_s8 + $0x20] sm:$0xff] }
 0x126   :  { %v2373_v11 = vpack.c.bf16 %v795_v4, %v793_v3  ;;  %v1646_v4 = vld [vmem:[%s3961_s8 + $0x18] sm:$0xff] }
 0x127   :  { %v2371_v12 = vpack.c.bf16 %v796_v7, %v794_v6  ;;  %v446_v13 = vpop.f32.mrb[16].mxu0  ;;  %1682 = vperm.xlu1 %2656, %v1644_v59  }
 0x128   :  { %v448_v14 = vpop.f32.mrb[17].mxu0  ;;  %2347 = vmatmul.mubr.msk.f32.gmra.mrb[122].mxu0 %vm139_vm0, %v136_v8  ;;  %v797_v19 = vmax.f32 %v446_v13, 0.0  ;;  %1687 = vperm.xlu0 %2655, %v1645_v60   ;;  %v1663_v60 = vld [vmem:[%s3961_s8 + $0xa0] sm:$0xff] }
 0x129   :  { %2372 = vmatprep.subr.bf16.mxu0 %v2371_v12  ;;  %2618 = vmatprep.subr.bf16.mxu1 %v2371_v12  ;;  %v798_v22 = vmax.f32 %v448_v14, 0.0 }
 0x12a   :  { %2374 = vmatpush1.bf16.msra.mxu0 %v2373_v11  ;;  %2634 = vmatpush1.bf16.msra.mxu1 %v2373_v11  ;;  %v1649_v11 = vld [vmem:[%s3961_s8 + $0x30] sm:$0xff] }
 0x12b   :  { %v452_v18 = vpop.f32.mrb[18].mxu0  ;;  %768 = vmatprep.mubr.f32.mxu0 %v2733_v2  ;;  %1692 = vperm.xlu1 %2656, %v1646_v4  }
 0x12c   :  { %v799_v20 = vmax.f32 %v452_v18, 0.0  ;;  %v454_v21 = vpop.f32.mrb[19].mxu0  ;;  %2348 = vmatmul.mubr.msk.f32.gmra.mrb[124].mxu0 %vm139_vm0, %v137_v15  ;;  %1697 = vperm.xlu0 %2655, %v1647_v5  }
 0x12d   :  { %v800_v23 = vmax.f32 %v454_v21, 0.0  ;;  %774 = vmatprep.mubr.f32.mxu0 %v2733_v2  ;;  %v910_v2 = vld [vmem:[%s3956_s3 + $0x8] sm:$0xff] }
 0x12e   :  { %v2377_v27 = vpack.c.bf16 %v799_v20, %v797_v19  ;;  %v1651_v19 = vld [vmem:[%s3961_s8 + $0x40] sm:$0xff] }
 0x12f   :  { %v2375_v28 = vpack.c.bf16 %v800_v23, %v798_v22  ;;  %v458_v29 = vpop.f32.mrb[20].mxu0  ;;  %1702 = vperm.xlu1 %2656, %v1648_v10  }
 0x130   :  { %v460_v30 = vpop.f32.mrb[21].mxu0  ;;  %2349 = vmatmul.mubr.msk.f32.gmra.mrb[126].mxu0 %vm139_vm0, %v138_v24  ;;  %v801_v34 = vmax.f32 %v458_v29, 0.0  ;;  %1707 = vperm.xlu0 %2655, %v1649_v11   ;;  %v1652_v24 = vld [vmem:[%s3961_s8 + $0x48] sm:$0xff]  ;;  %v1667_v11 = vld [vmem:[%s3961_s8 + $0xc0] sm:$0xff] }
 0x131   :  { %2376 = vmatprep.subr.bf16.mxu0 %v2375_v28  ;;  %2619 = vmatprep.subr.bf16.mxu1 %v2375_v28  ;;  %v802_v37 = vmax.f32 %v460_v30, 0.0  ;;  %v1654_v30 = vld [vmem:[%s3961_s8 + $0x58] sm:$0xff] }
 0x132   :  { %2378 = vmatpush1.bf16.msra.mxu0 %v2377_v27  ;;  %2635 = vmatpush1.bf16.msra.mxu1 %v2377_v27 }
 0x133   :  { %v464_v33 = vpop.f32.mrb[22].mxu0  ;;  %1229 = vmatprep.mubr.f32.mxu0 %v910_v2  ;;  %1712 = vperm.xlu1 %2656, %v1650_v16   ;;  %v1668_v16 = vld [vmem:[%s3961_s8 + $0xc8] sm:$0xff] }
 0x134   :  { %v803_v35 = vmax.f32 %v464_v33, 0.0  ;;  %v466_v36 = vpop.f32.mrb[23].mxu0  ;;  %1717 = vperm.xlu0 %2655, %v1651_v19  }
 0x135   :  { %v804_v38 = vmax.f32 %v466_v36, 0.0 }
 0x136   :  { %v2381_v41 = vpack.c.bf16 %v803_v35, %v801_v34 }
 0x137   :  { %v2379_v42 = vpack.c.bf16 %v804_v38, %v802_v37  ;;  %v470_v43 = vpop.f32.mrb[24].mxu0  ;;  %1722 = vperm.xlu1 %2656, %v1652_v24   ;;  %v1656_v37 = vld [vmem:[%s3961_s8 + $0x68] sm:$0xff]  ;;  %v1657_v38 = vld [vmem:[%s3961_s8 + $0x70] sm:$0xff]  ;;  %v1670_v24 = vld [vmem:[%s3961_s8 + $0xd8] sm:$0xff] }
 0x138   :  { %v472_v44 = vpop.f32.mrb[25].mxu0  ;;  %v805_v48 = vmax.f32 %v470_v43, 0.0  ;;  %1727 = vperm.xlu0 %2655, %v1653_v25   ;;  %v1658_v43 = vld [vmem:[%s3961_s8 + $0x78] sm:$0xff]  ;;  %v1671_v25 = vld [vmem:[%s3961_s8 + $0xe0] sm:$0xff] }
 0x139   :  { %2380 = vmatprep.subr.bf16.mxu0 %v2379_v42  ;;  %2620 = vmatprep.subr.bf16.mxu1 %v2379_v42  ;;  %v806_v51 = vmax.f32 %v472_v44, 0.0 }
 0x13a   :  { %2382 = vmatpush1.bf16.msra.mxu0 %v2381_v41  ;;  %2636 = vmatpush1.bf16.msra.mxu1 %v2381_v41 }
 0x13b   :  { %v476_v47 = vpop.f32.mrb[26].mxu0  ;;  %1732 = vperm.xlu1 %2656, %v1654_v30   ;;  %v1672_v30 = vld [vmem:[%s3961_s8 + $0xe8] sm:$0xff] }
 0x13c   :  { %v807_v49 = vmax.f32 %v476_v47, 0.0  ;;  %v478_v50 = vpop.f32.mrb[27].mxu0  ;;  %1737 = vperm.xlu0 %2655, %v1655_v32  }
 0x13d   :  { %v808_v52 = vmax.f32 %v478_v50, 0.0 }
 0x13e   :  { %v2385_v55 = vpack.c.bf16 %v807_v49, %v805_v48 }
 0x13f   :  { %v2383_v56 = vpack.c.bf16 %v808_v52, %v806_v51  ;;  %v482_v57 = vpop.f32.mrb[28].mxu0  ;;  %1742 = vperm.xlu1 %2656, %v1656_v37   ;;  %v1660_v51 = vld [vmem:[%s3961_s8 + $0x88] sm:$0xff]  ;;  %v1661_v52 = vld [vmem:[%s3961_s8 + $0x90] sm:$0xff]  ;;  %v1674_v37 = vld [vmem:[%s3961_s8 + $0xf8] sm:$0xff] }
 0x140   :  { %v484_v58 = vpop.f32.mrb[29].mxu0  ;;  %v809_v62 = vmax.f32 %v482_v57, 0.0  ;;  %1747 = vperm.xlu0 %2655, %v1657_v38   ;;  %v1662_v57 = vld [vmem:[%s3961_s8 + $0x98] sm:$0xff]  ;;  %v2157_v38 = vld [vmem:[#allocation3] sm:$0x1] }
 0x141   :  { %2384 = vmatprep.subr.bf16.mxu0 %v2383_v56  ;;  %2621 = vmatprep.subr.bf16.mxu1 %v2383_v56  ;;  %v810_v1 = vmax.f32 %v484_v58, 0.0 }
 0x142   :  { %2386 = vmatpush1.bf16.msra.mxu0 %v2385_v55  ;;  %2637 = vmatpush1.bf16.msra.mxu1 %v2385_v55 }
 0x143   :  { %v488_v61 = vpop.f32.mrb[30].mxu0  ;;  %1752 = vperm.xlu1 %2656, %v1658_v43   ;;  %v1487_v43 = vld [vmem:[#allocation2] sm:$0x1] }
 0x144   :  { %v811_v63 = vmax.f32 %v488_v61, 0.0  ;;  %v490_v0 = vpop.f32.mrb[31].mxu0  ;;  %1757 = vperm.xlu0 %2655, %v1659_v46  }
 0x145   :  { %v812_v3 = vmax.f32 %v490_v0, 0.0 }
 0x146   :  { %v2389_v6 = vpack.c.bf16 %v811_v63, %v809_v62 }
 0x147   :  { %v2387_v7 = vpack.c.bf16 %v812_v3, %v810_v1  ;;  %v494_v8 = vpop.f32.mrb[32].mxu0  ;;  %1762 = vperm.xlu1 %2656, %v1660_v51   ;;  %v1664_v1 = vld [vmem:[%s3961_s8 + $0xa8] sm:$0xff]  ;;  %v1665_v3 = vld [vmem:[%s3961_s8 + $0xb0] sm:$0xff] }
 0x148   :  { %v496_v9 = vpop.f32.mrb[33].mxu0  ;;  %v813_v13 = vmax.f32 %v494_v8, 0.0  ;;  %1767 = vperm.xlu0 %2655, %v1661_v52   ;;  %v1666_v8 = vld [vmem:[%s3961_s8 + $0xb8] sm:$0xff] }
 0x149   :  { %2388 = vmatprep.subr.bf16.mxu0 %v2387_v7  ;;  %2622 = vmatprep.subr.bf16.mxu1 %v2387_v7  ;;  %v814_v17 = vmax.f32 %v496_v9, 0.0 }
 0x14a   :  { %2390 = vmatpush1.bf16.msra.mxu0 %v2389_v6  ;;  %2638 = vmatpush1.bf16.msra.mxu1 %v2389_v6 }
 0x14b   :  { %v500_v12 = vpop.f32.mrb[34].mxu0  ;;  %1772 = vperm.xlu1 %2656, %v1662_v57   ;;  %v912_v57 = vld [vmem:[%s3956_s3 + $0x18] sm:$0xff] }
 0x14c   :  { %v815_v14 = vmax.f32 %v500_v12, 0.0  ;;  %v502_v15 = vpop.f32.mrb[35].mxu0  ;;  %1777 = vperm.xlu0 %2655, %v1663_v60  }
 0x14d   :  { %v816_v18 = vmax.f32 %v502_v15, 0.0 }
 0x14e   :  { %v2393_v20 = vpack.c.bf16 %v815_v14, %v813_v13 }
 0x14f   :  { %v2391_v21 = vpack.c.bf16 %v816_v18, %v814_v17  ;;  %v506_v22 = vpop.f32.mrb[36].mxu0  ;;  %1782 = vperm.xlu1 %2656, %v1664_v1   ;;  %v1669_v17 = vld [vmem:[%s3961_s8 + $0xd0] sm:$0xff] }
 0x150   :  { %v508_v23 = vpop.f32.mrb[37].mxu0  ;;  %v817_v27 = vmax.f32 %v506_v22, 0.0  ;;  %1787 = vperm.xlu0 %2655, %v1665_v3   ;;  %v943_v1 = vld [vmem:[%s3956_s3 + $0x110] sm:$0xff] }
 0x151   :  { %2392 = vmatprep.subr.bf16.mxu0 %v2391_v21  ;;  %2623 = vmatprep.subr.bf16.mxu1 %v2391_v21  ;;  %v818_v2 = vmax.f32 %v508_v23, 0.0 }
 0x152   :  { %2394 = vmatpush1.bf16.msra.mxu0 %v2393_v20  ;;  %2639 = vmatpush1.bf16.msra.mxu1 %v2393_v20 }
 0x153   :  { %v512_v26 = vpop.f32.mrb[38].mxu0  ;;  %1792 = vperm.xlu1 %2656, %v1666_v8  }
 0x154   :  { %v819_v28 = vmax.f32 %v512_v26, 0.0  ;;  %v514_v29 = vpop.f32.mrb[39].mxu0  ;;  %1797 = vperm.xlu0 %2655, %v1667_v11  }
 0x155   :  { %v820_v31 = vmax.f32 %v514_v29, 0.0 }
 0x156   :  { %v2397_v33 = vpack.c.bf16 %v819_v28, %v817_v27 }
 0x157   :  { %v2395_v34 = vpack.c.bf16 %v820_v31, %v818_v2  ;;  %v518_v35 = vpop.f32.mrb[40].mxu0  ;;  %1802 = vperm.xlu1 %2656, %v1668_v16   ;;  %v1673_v2 = vld [vmem:[%s3961_s8 + $0xf0] sm:$0xff] }
 0x158   :  { %v520_v36 = vpop.f32.mrb[41].mxu0  ;;  %v821_v40 = vmax.f32 %v518_v35, 0.0  ;;  %1807 = vperm.xlu0 %2655, %v1669_v17  }
 0x159   :  { %2396 = vmatprep.subr.bf16.mxu0 %v2395_v34  ;;  %2624 = vmatprep.subr.bf16.mxu1 %v2395_v34  ;;  %v822_v44 = vmax.f32 %v520_v36, 0.0 }
 0x15a   :  { %2398 = vmatpush1.bf16.msra.mxu0 %v2397_v33  ;;  %2640 = vmatpush1.bf16.msra.mxu1 %v2397_v33 }
 0x15b   :  { %v524_v39 = vpop.f32.mrb[42].mxu0  ;;  %1812 = vperm.xlu1 %2656, %v1670_v24  }
 0x15c   :  { %v823_v41 = vmax.f32 %v524_v39, 0.0  ;;  %v526_v42 = vpop.f32.mrb[43].mxu0  ;;  %1817 = vperm.xlu0 %2655, %v1671_v25  }
 0x15d   :  { %v824_v45 = vmax.f32 %v526_v42, 0.0 }
 0x15e   :  { %v2401_v47 = vpack.c.bf16 %v823_v41, %v821_v40 }
 0x15f   :  { %v2399_v48 = vpack.c.bf16 %v824_v45, %v822_v44  ;;  %v530_v49 = vpop.f32.mrb[44].mxu0  ;;  %1822 = vperm.xlu1 %2656, %v1672_v30   ;;  %v920_v30 = vld [vmem:[%s3956_s3 + $0x58] sm:$0xff] }
 0x160   :  { %v532_v50 = vpop.f32.mrb[45].mxu0  ;;  %v825_v54 = vmax.f32 %v530_v49, 0.0  ;;  %1827 = vperm.xlu0 %2655, %v1673_v2   ;;  %v952_v2 = vld [vmem:[%s3956_s3 + $0x158] sm:$0xff] }
 0x161   :  { %2400 = vmatprep.subr.bf16.mxu0 %v2399_v48  ;;  %2625 = vmatprep.subr.bf16.mxu1 %v2399_v48  ;;  %v826_v58 = vmax.f32 %v532_v50, 0.0 }
 0x162   :  { %2402 = vmatpush1.bf16.msra.mxu0 %v2401_v47  ;;  %2641 = vmatpush1.bf16.msra.mxu1 %v2401_v47 }
 0x163   :  { %v536_v53 = vpop.f32.mrb[46].mxu0  ;;  %1832 = vperm.xlu1 %2656, %v1674_v37   ;;  %v951_v37 = vld [vmem:[%s3956_s3 + $0x150] sm:$0xff] }
 0x164   :  { %v827_v55 = vmax.f32 %v536_v53, 0.0  ;;  %v538_v56 = vpop.f32.mrb[47].mxu0  ;;  %2160 = vperm.xlu0 %2655, %v2157_v38  }
 0x165   :  { %v828_v59 = vmax.f32 %v538_v56, 0.0 }
 0x166   :  { %v2405_v61 = vpack.c.bf16 %v827_v55, %v825_v54  ;;  %v909_v54 = vld [vmem:[%s3956_s3] sm:$0xff] }
 0x167   :  { %v2403_v62 = vpack.c.bf16 %v828_v59, %v826_v58  ;;  %v542_v63 = vpop.f32.mrb[48].mxu0  ;;  %1490 = vperm.xlu1 %2656, %v1487_v43   ;;  %v941_v55 = vld [vmem:[%s3956_s3 + $0x100] sm:$0xff]  ;;  %v944_v58 = vld [vmem:[%s3956_s3 + $0x118] sm:$0xff] }
 0x168   :  { %v544_v0 = vpop.f32.mrb[49].mxu0  ;;  %v829_v5 = vmax.f32 %v542_v63, 0.0 }
 0x169   :  { %2404 = vmatprep.subr.bf16.mxu0 %v2403_v62  ;;  %2626 = vmatprep.subr.bf16.mxu1 %v2403_v62  ;;  %v830_v9 = vmax.f32 %v544_v0, 0.0  ;;  %v911_v0 = vld [vmem:[%s3956_s3 + $0x10] sm:$0xff] }
 0x16a   :  { %2406 = vmatpush1.bf16.msra.mxu0 %v2405_v61  ;;  %2642 = vmatpush1.bf16.msra.mxu1 %v2405_v61 }
 0x16b   :  { %v548_v4 = vpop.f32.mrb[50].mxu0 }
 0x16c   :  { %v831_v6 = vmax.f32 %v548_v4, 0.0  ;;  %v550_v7 = vpop.f32.mrb[51].mxu0  ;;  %v914_v4 = vld [vmem:[%s3956_s3 + $0x28] sm:$0xff] }
 0x16d   :  { %v832_v10 = vmax.f32 %v550_v7, 0.0 }
 0x16e   :  { %v2409_v12 = vpack.c.bf16 %v831_v6, %v829_v5  ;;  %v946_v5 = vld [vmem:[%s3956_s3 + $0x128] sm:$0xff] }
 0x16f   :  { %v2407_v13 = vpack.c.bf16 %v832_v10, %v830_v9  ;;  %v554_v14 = vpop.f32.mrb[52].mxu0  ;;  %v913_v9 = vld [vmem:[%s3956_s3 + $0x20] sm:$0xff] }
 0x170   :  { %v556_v15 = vpop.f32.mrb[53].mxu0  ;;  %v833_v19 = vmax.f32 %v554_v14, 0.0  ;;  %v945_v10 = vld [vmem:[%s3956_s3 + $0x120] sm:$0xff] }
 0x171   :  { %2408 = vmatprep.subr.bf16.mxu0 %v2407_v13  ;;  %2627 = vmatprep.subr.bf16.mxu1 %v2407_v13  ;;  %v834_v22 = vmax.f32 %v556_v15, 0.0  ;;  %v948_v13 = vld [vmem:[%s3956_s3 + $0x138] sm:$0xff] }
 0x172   :  { %2410 = vmatpush1.bf16.msra.mxu0 %v2409_v12  ;;  %2643 = vmatpush1.bf16.msra.mxu1 %v2409_v12  ;;  %v916_v12 = vld [vmem:[%s3956_s3 + $0x38] sm:$0xff] }
 0x173   :  { %v560_v18 = vpop.f32.mrb[54].mxu0 }
 0x174   :  { %v835_v20 = vmax.f32 %v560_v18, 0.0  ;;  %v562_v21 = vpop.f32.mrb[55].mxu0 }
 0x175   :  { %v836_v23 = vmax.f32 %v562_v21, 0.0 }
 0x176   :  { %v2413_v26 = vpack.c.bf16 %v835_v20, %v833_v19  ;;  %v915_v19 = vld [vmem:[%s3956_s3 + $0x30] sm:$0xff] }
 0x177   :  { %v2411_v27 = vpack.c.bf16 %v836_v23, %v834_v22  ;;  %v566_v28 = vpop.f32.mrb[56].mxu0  ;;  %v947_v20 = vld [vmem:[%s3956_s3 + $0x130] sm:$0xff]  ;;  %v918_v22 = vld [vmem:[%s3956_s3 + $0x48] sm:$0xff] }
 0x178   :  { %v568_v29 = vpop.f32.mrb[57].mxu0  ;;  %v837_v32 = vmax.f32 %v566_v28, 0.0  ;;  %v950_v23 = vld [vmem:[%s3956_s3 + $0x148] sm:$0xff]  ;;  %v949_v28 = vld [vmem:[%s3956_s3 + $0x140] sm:$0xff] }
 0x179   :  { %2412 = vmatprep.subr.bf16.mxu0 %v2411_v27  ;;  %2628 = vmatprep.subr.bf16.mxu1 %v2411_v27  ;;  %v838_v35 = vmax.f32 %v568_v29, 0.0  ;;  %v917_v27 = vld [vmem:[%s3956_s3 + $0x40] sm:$0xff] }
 0x17a   :  { %2414 = vmatpush1.bf16.msra.mxu0 %v2413_v26  ;;  %2644 = vmatpush1.bf16.msra.mxu1 %v2413_v26 }
 0x17b   :  { %v572_v31 = vpop.f32.mrb[58].mxu0 }
 0x17c   :  { %v839_v33 = vmax.f32 %v572_v31, 0.0  ;;  %v574_v34 = vpop.f32.mrb[59].mxu0 }
 0x17d   :  { %v840_v36 = vmax.f32 %v574_v34, 0.0 }
 0x17e   :  { %v2417_v39 = vpack.c.bf16 %v839_v33, %v837_v32 }
 0x17f   :  { %v2415_v40 = vpack.c.bf16 %v840_v36, %v838_v35  ;;  %v578_v41 = vpop.f32.mrb[60].mxu0  ;;  %v919_v36 = vld [vmem:[%s3956_s3 + $0x50] sm:$0xff] }
 0x180   :  { %v580_v42 = vpop.f32.mrb[61].mxu0  ;;  %v841_v45 = vmax.f32 %v578_v41, 0.0 }
 0x181   :  { %2416 = vmatprep.subr.bf16.mxu0 %v2415_v40  ;;  %2629 = vmatprep.subr.bf16.mxu1 %v2415_v40  ;;  %v842_v48 = vmax.f32 %v580_v42, 0.0  ;;  %v954_v40 = vld [vmem:[%s3956_s3 + $0x168] sm:$0xff] }
 0x182   :  { %2418 = vmatpush1.bf16.msra.mxu0 %v2417_v39  ;;  %2645 = vmatpush1.bf16.msra.mxu1 %v2417_v39  ;;  %v922_v39 = vld [vmem:[%s3956_s3 + $0x68] sm:$0xff] }
 0x183   :  { %v584_v44 = vpop.f32.mrb[62].mxu0 }
 0x184   :  { %v843_v46 = vmax.f32 %v584_v44, 0.0  ;;  %v586_v47 = vpop.f32.mrb[63].mxu0  ;;  %v921_v44 = vld [vmem:[%s3956_s3 + $0x60] sm:$0xff] }
 0x185   :  { %v844_v49 = vmax.f32 %v586_v47, 0.0  ;;  %v924_v47 = vld [vmem:[%s3956_s3 + $0x78] sm:$0xff] }
 0x186   :  { %v2421_v50 = vpack.c.bf16 %v843_v46, %v841_v45  ;;  %v953_v45 = vld [vmem:[%s3956_s3 + $0x160] sm:$0xff] }
 0x187   :  { %v2419_v51 = vpack.c.bf16 %v844_v49, %v842_v48  ;;  %v590_v52 = vpop.f32.mrb[64].mxu0  ;;  %v956_v48 = vld [vmem:[%s3956_s3 + $0x178] sm:$0xff] }
 0x188   :  { %v592_v53 = vpop.f32.mrb[65].mxu0  ;;  %v845_v56 = vmax.f32 %v590_v52, 0.0 }
 0x189   :  { %2420 = vmatprep.subr.bf16.mxu0 %v2419_v51  ;;  %2630 = vmatprep.subr.bf16.mxu1 %v2419_v51  ;;  %v846_v59 = vmax.f32 %v592_v53, 0.0 }
 0x18a   :  { %2422 = vmatpush1.bf16.msra.mxu0 %v2421_v50  ;;  %2646 = vmatpush1.bf16.msra.mxu1 %v2421_v50 }
 0x18b   :  { %v596_v60 = vpop.f32.mrb[66].mxu0 }
 0x18c   :  { %v847_v61 = vmax.f32 %v596_v60, 0.0  ;;  %v598_v62 = vpop.f32.mrb[67].mxu0 }
 0x18d   :  { %1230 = vmatmul.mubr.f32.vlgmr.msra.gmra.mrb[128].mxu0 %v909_v54  ;;  %1326 = vmatmul.mubr.f32.vlgmr.msra.gmra.mrb[0].mxu1 %v941_v55  ;;  %v848_v63 = vmax.f32 %v598_v62, 0.0  ;;  %v923_v54 = vld [vmem:[%s3956_s3 + $0x70] sm:$0xff]  ;;  %v925_v62 = vld [vmem:[%s3956_s3 + $0x80] sm:$0xff] }
 0x18e   :  { %1235 = vmatprep.mubr.f32.mxu0 %v912_v57  ;;  %1331 = vmatprep.mubr.f32.mxu1 %v944_v58  ;;  %v3363_v3 = vpack.c.bf16 %v847_v61, %v845_v56  ;;  %v955_v55 = vld [vmem:[%s3956_s3 + $0x170] sm:$0xff]  ;;  %v926_v57 = vld [vmem:[%s3956_s3 + $0x88] sm:$0xff] }
 0x18f   :  { %v3371_v6 = vpack.c.bf16 %v848_v63, %v846_v59  ;;  %v602_v7 = vpop.f32.mrb[68].mxu0  ;;  %v958_v58 = vld [vmem:[%s3956_s3 + $0x188] sm:$0xff]  ;;  %v957_v63 = vld [vmem:[%s3956_s3 + $0x180] sm:$0xff] }
 0x190   :  { %v604_v8 = vpop.f32.mrb[69].mxu0  ;;  %v849_v11 = vmax.f32 %v602_v7, 0.0 }
 0x191   :  { %1236 = vmatmul.mubr.f32.gmra.mrb[130].mxu0 %v911_v0  ;;  %1332 = vmatmul.mubr.f32.gmra.mrb[2].mxu1 %v943_v1  ;;  %v850_v14 = vmax.f32 %v604_v8, 0.0  ;;  %v928_v1 = vld [vmem:[%s3956_s3 + $0x98] sm:$0xff] }
 0x192   :  { %1241 = vmatprep.mubr.f32.mxu0 %v914_v4  ;;  %1337 = vmatprep.mubr.f32.mxu1 %v946_v5  ;;  %v960_v4 = vld [vmem:[%s3956_s3 + $0x198] sm:$0xff] }
 0x193   :  { %v608_v15 = vpop.f32.mrb[70].mxu0 }
 0x194   :  { %v851_v16 = vmax.f32 %v608_v15, 0.0  ;;  %v610_v17 = vpop.f32.mrb[71].mxu0  ;;  %v962_v15 = vld [vmem:[%s3956_s3 + $0x1a8] sm:$0xff] }
 0x195   :  { %1242 = vmatmul.mubr.f32.gmra.mrb[132].mxu0 %v913_v9  ;;  %1338 = vmatmul.mubr.f32.gmra.mrb[4].mxu1 %v945_v10  ;;  %v852_v18 = vmax.f32 %v610_v17, 0.0 }
 0x196   :  { %1247 = vmatprep.mubr.f32.mxu0 %v916_v12  ;;  %1343 = vmatprep.mubr.f32.mxu1 %v948_v13  ;;  %v3391_v21 = vpack.c.bf16 %v851_v16, %v849_v11  ;;  %v927_v11 = vld [vmem:[%s3956_s3 + $0x90] sm:$0xff] }
 0x197   :  { %v3399_v24 = vpack.c.bf16 %v852_v18, %v850_v14  ;;  %v614_v25 = vpop.f32.mrb[72].mxu0  ;;  %v959_v12 = vld [vmem:[%s3956_s3 + $0x190] sm:$0xff]  ;;  %v930_v14 = vld [vmem:[%s3956_s3 + $0xa8] sm:$0xff] }
 0x198   :  { %v616_v26 = vpop.f32.mrb[73].mxu0  ;;  %v853_v29 = vmax.f32 %v614_v25, 0.0  ;;  %v964_v25 = vld [vmem:[%s3956_s3 + $0x1b8] sm:$0xff] }
 0x199   :  { %1248 = vmatmul.mubr.f32.gmra.mrb[134].mxu0 %v915_v19  ;;  %1344 = vmatmul.mubr.f32.gmra.mrb[6].mxu1 %v947_v20  ;;  %v854_v31 = vmax.f32 %v616_v26, 0.0  ;;  %v929_v19 = vld [vmem:[%s3956_s3 + $0xa0] sm:$0xff] }
 0x19a   :  { %1253 = vmatprep.mubr.f32.mxu0 %v918_v22  ;;  %1349 = vmatprep.mubr.f32.mxu1 %v950_v23  ;;  %v961_v20 = vld [vmem:[%s3956_s3 + $0x1a0] sm:$0xff]  ;;  %v932_v23 = vld [vmem:[%s3956_s3 + $0xb8] sm:$0xff] }
 0x19b   :  { %v620_v32 = vpop.f32.mrb[74].mxu0 }
 0x19c   :  { %v855_v33 = vmax.f32 %v620_v32, 0.0  ;;  %v622_v34 = vpop.f32.mrb[75].mxu0 }
 0x19d   :  { %1254 = vmatmul.mubr.f32.gmra.mrb[136].mxu0 %v917_v27  ;;  %1350 = vmatmul.mubr.f32.gmra.mrb[8].mxu1 %v949_v28  ;;  %v856_v35 = vmax.f32 %v622_v34, 0.0  ;;  %v966_v34 = vld [vmem:[%s3956_s3 + $0x1c8] sm:$0xff] }
 0x19e   :  { %1259 = vmatprep.mubr.f32.mxu0 %v920_v30  ;;  %1355 = vmatprep.mubr.f32.mxu1 %v952_v2  ;;  %v3419_v38 = vpack.c.bf16 %v855_v33, %v853_v29  ;;  %v931_v2 = vld [vmem:[%s3956_s3 + $0xb0] sm:$0xff]  ;;  %v934_v33 = vld [vmem:[%s3956_s3 + $0xc8] sm:$0xff] }
 0x19f   :  { %v3427_v41 = vpack.c.bf16 %v856_v35, %v854_v31  ;;  %v626_v42 = vpop.f32.mrb[76].mxu0  ;;  %v963_v31 = vld [vmem:[%s3956_s3 + $0x1b0] sm:$0xff] }
 0x1a0   :  { %v628_v43 = vpop.f32.mrb[77].mxu0  ;;  %v857_v46 = vmax.f32 %v626_v42, 0.0 }
 0x1a1   :  { %1260 = vmatmul.mubr.f32.gmra.mrb[138].mxu0 %v919_v36  ;;  %1356 = vmatmul.mubr.f32.gmra.mrb[10].mxu1 %v951_v37  ;;  %v858_v49 = vmax.f32 %v628_v43, 0.0  ;;  %v936_v43 = vld [vmem:[%s3956_s3 + $0xd8] sm:$0xff] }
 0x1a2   :  { %1265 = vmatprep.mubr.f32.mxu0 %v922_v39  ;;  %1361 = vmatprep.mubr.f32.mxu1 %v954_v40  ;;  %v933_v39 = vld [vmem:[%s3956_s3 + $0xc0] sm:$0xff] }
 0x1a3   :  { %v632_v50 = vpop.f32.mrb[78].mxu0  ;;  %v965_v40 = vld [vmem:[%s3956_s3 + $0x1c0] sm:$0xff] }
 0x1a4   :  { %v859_v51 = vmax.f32 %v632_v50, 0.0  ;;  %v634_v52 = vpop.f32.mrb[79].mxu0  ;;  %v935_v50 = vld [vmem:[%s3956_s3 + $0xd0] sm:$0xff] }
 0x1a5   :  { %1266 = vmatmul.mubr.f32.gmra.mrb[140].mxu0 %v921_v44  ;;  %1362 = vmatmul.mubr.f32.gmra.mrb[12].mxu1 %v953_v45  ;;  %v860_v53 = vmax.f32 %v634_v52, 0.0  ;;  %v968_v44 = vld [vmem:[%s3956_s3 + $0x1d8] sm:$0xff] }
 0x1a6   :  { %1271 = vmatprep.mubr.f32.mxu0 %v924_v47  ;;  %1367 = vmatprep.mubr.f32.mxu1 %v956_v48  ;;  %v3447_v56 = vpack.c.bf16 %v859_v51, %v857_v46  ;;  %v967_v51 = vld [vmem:[%s3956_s3 + $0x1d0] sm:$0xff] }
 0x1a7   :  { %v3455_v59 = vpack.c.bf16 %v860_v53, %v858_v49  ;;  %v638_v60 = vpop.f32.mrb[80].mxu0  ;;  %v938_v53 = vld [vmem:[%s3956_s3 + $0xe8] sm:$0xff] }
 0x1a8   :  { %v640_v61 = vpop.f32.mrb[81].mxu0  ;;  %v861_v0 = vmax.f32 %v638_v60, 0.0  ;;  %v937_v60 = vld [vmem:[%s3956_s3 + $0xe0] sm:$0xff] }
 0x1a9   :  { %1272 = vmatmul.mubr.f32.gmra.mrb[142].mxu0 %v923_v54  ;;  %1368 = vmatmul.mubr.f32.gmra.mrb[14].mxu1 %v955_v55  ;;  %v862_v5 = vmax.f32 %v640_v61, 0.0  ;;  %v970_v54 = vld [vmem:[%s3956_s3 + $0x1e8] sm:$0xff]  ;;  %v969_v61 = vld [vmem:[%s3956_s3 + $0x1e0] sm:$0xff] }
 0x1aa   :  { %1277 = vmatprep.mubr.f32.mxu0 %v926_v57  ;;  %1373 = vmatprep.mubr.f32.mxu1 %v958_v58 }
 0x1ab   :  { %v644_v7 = vpop.f32.mrb[82].mxu0 }
 0x1ac   :  { %v863_v8 = vmax.f32 %v644_v7, 0.0  ;;  %v646_v9 = vpop.f32.mrb[83].mxu0 }
 0x1ad   :  { %1278 = vmatmul.mubr.f32.gmra.mrb[144].mxu0 %v925_v62  ;;  %1374 = vmatmul.mubr.f32.gmra.mrb[16].mxu1 %v957_v63  ;;  %v864_v10 = vmax.f32 %v646_v9, 0.0  ;;  %v940_v63 = vld [vmem:[%s3956_s3 + $0xf8] sm:$0xff]  ;;  %v939_v9 = vld [vmem:[%s3956_s3 + $0xf0] sm:$0xff] }
 0x1ae   :  { %1283 = vmatprep.mubr.f32.mxu0 %v928_v1  ;;  %1379 = vmatprep.mubr.f32.mxu1 %v960_v4  ;;  %v3475_v13 = vpack.c.bf16 %v863_v8, %v861_v0  ;;  %v972_v0 = vld [vmem:[%s3956_s3 + $0x1f8] sm:$0xff] }
 0x1af   :  { %v3483_v16 = vpack.c.bf16 %v864_v10, %v862_v5  ;;  %v650_v17 = vpop.f32.mrb[84].mxu0  ;;  %v971_v10 = vld [vmem:[%s3956_s3 + $0x1f0] sm:$0xff] }
 0x1b0   :  { %v652_v18 = vpop.f32.mrb[85].mxu0  ;;  %v865_v22 = vmax.f32 %v650_v17, 0.0 }
 0x1b1   :  { %1284 = vmatmul.mubr.f32.gmra.mrb[146].mxu0 %v927_v11  ;;  %1380 = vmatmul.mubr.f32.gmra.mrb[18].mxu1 %v959_v12  ;;  %v866_v26 = vmax.f32 %v652_v18, 0.0 }
 0x1b2   :  { %1289 = vmatprep.mubr.f32.mxu0 %v930_v14  ;;  %1385 = vmatprep.mubr.f32.mxu1 %v962_v15 }
 0x1b3   :  { %v656_v27 = vpop.f32.mrb[86].mxu0 }
 0x1b4   :  { %v867_v28 = vmax.f32 %v656_v27, 0.0  ;;  %v658_v29 = vpop.f32.mrb[87].mxu0 }
 0x1b5   :  { %1290 = vmatmul.mubr.f32.gmra.mrb[148].mxu0 %v929_v19  ;;  %1386 = vmatmul.mubr.f32.gmra.mrb[20].mxu1 %v961_v20  ;;  %v868_v30 = vmax.f32 %v658_v29, 0.0 }
 0x1b6   :  { %1295 = vmatprep.mubr.f32.mxu0 %v932_v23  ;;  %1391 = vmatprep.mubr.f32.mxu1 %v964_v25  ;;  %v3503_v32 = vpack.c.bf16 %v867_v28, %v865_v22 }
 0x1b7   :  { %v3511_v35 = vpack.c.bf16 %v868_v30, %v866_v26  ;;  %v662_v36 = vpop.f32.mrb[88].mxu0 }
 0x1b8   :  { %v664_v37 = vpop.f32.mrb[89].mxu0  ;;  %v869_v42 = vmax.f32 %v662_v36, 0.0 }
 0x1b9   :  { %1296 = vmatmul.mubr.f32.gmra.mrb[150].mxu0 %v931_v2  ;;  %1392 = vmatmul.mubr.f32.gmra.mrb[22].mxu1 %v963_v31  ;;  %v870_v45 = vmax.f32 %v664_v37, 0.0 }
 0x1ba   :  { %1301 = vmatprep.mubr.f32.mxu0 %v934_v33  ;;  %1397 = vmatprep.mubr.f32.mxu1 %v966_v34 }
 0x1bb   :  { %v668_v46 = vpop.f32.mrb[90].mxu0 }
 0x1bc   :  { %v871_v47 = vmax.f32 %v668_v46, 0.0  ;;  %v670_v48 = vpop.f32.mrb[91].mxu0 }
 0x1bd   :  { %1302 = vmatmul.mubr.f32.gmra.mrb[152].mxu0 %v933_v39  ;;  %1398 = vmatmul.mubr.f32.gmra.mrb[24].mxu1 %v965_v40  ;;  %v872_v49 = vmax.f32 %v670_v48, 0.0 }
 0x1be   :  { %1307 = vmatprep.mubr.f32.mxu0 %v936_v43  ;;  %1403 = vmatprep.mubr.f32.mxu1 %v968_v44  ;;  %v3531_v52 = vpack.c.bf16 %v871_v47, %v869_v42 }
 0x1bf   :  { %v3539_v55 = vpack.c.bf16 %v872_v49, %v870_v45  ;;  %v674_v57 = vpop.f32.mrb[92].mxu0 }
 0x1c0   :  { %v676_v58 = vpop.f32.mrb[93].mxu0  ;;  %v873_v62 = vmax.f32 %v674_v57, 0.0 }
 0x1c1   :  { %1308 = vmatmul.mubr.f32.gmra.mrb[154].mxu0 %v935_v50  ;;  %1404 = vmatmul.mubr.f32.gmra.mrb[26].mxu1 %v967_v51  ;;  %v874_v1 = vmax.f32 %v676_v58, 0.0 }
 0x1c2   :  { %1313 = vmatprep.mubr.f32.mxu0 %v938_v53  ;;  %1409 = vmatprep.mubr.f32.mxu1 %v970_v54 }
 0x1c3   :  { %v680_v4 = vpop.f32.mrb[94].mxu0 }
 0x1c4   :  { %v875_v5 = vmax.f32 %v680_v4, 0.0  ;;  %v682_v7 = vpop.f32.mrb[95].mxu0 }
 0x1c5   :  { %1314 = vmatmul.mubr.f32.gmra.mrb[156].mxu0 %v937_v60  ;;  %1410 = vmatmul.mubr.f32.gmra.mrb[28].mxu1 %v969_v61  ;;  %v876_v8 = vmax.f32 %v682_v7, 0.0 }
 0x1c6   :  { %1319 = vmatprep.mubr.f32.mxu0 %v940_v63  ;;  %1415 = vmatprep.mubr.f32.mxu1 %v972_v0  ;;  %v3559_v11 = vpack.c.bf16 %v875_v5, %v873_v62 }
 0x1c7   :  { %v3561_v12 = vpack.c.bf16 %v876_v8, %v874_v1  ;;  %v686_v14 = vpop.f32.mrb[96].mxu0 }
 0x1c8   :  { %v688_v15 = vpop.f32.mrb[97].mxu0  ;;  %v877_v17 = vmax.f32 %v686_v14, 0.0 }
 0x1c9   :  { %1320 = vmatmul.mubr.f32.gmra.mrb[158].mxu0 %v939_v9  ;;  %1416 = vmatmul.mubr.f32.gmra.mrb[30].mxu1 %v971_v10  ;;  %v878_v18 = vmax.f32 %v688_v15, 0.0 }
 0x1cb   :  { %v692_v19 = vpop.f32.mrb[98].mxu0 }
 0x1cc   :  { %v879_v20 = vmax.f32 %v692_v19, 0.0  ;;  %v694_v22 = vpop.f32.mrb[99].mxu0 }
 0x1cd   :  { %v880_v23 = vmax.f32 %v694_v22, 0.0 }
 0x1ce   :  { %v3563_v25 = vpack.c.bf16 %v879_v20, %v877_v17 }
 0x1cf   :  { %v3565_v26 = vpack.c.bf16 %v880_v23, %v878_v18  ;;  %v698_v27 = vpop.f32.mrb[100].mxu0 }
 0x1d0   :  { %v700_v28 = vpop.f32.mrb[101].mxu0  ;;  %v881_v29 = vmax.f32 %v698_v27, 0.0 }
 0x1d1   :  { %v882_v30 = vmax.f32 %v700_v28, 0.0 }
 0x1d3   :  { %v704_v2 = vpop.f32.mrb[102].mxu0 }
 0x1d4   :  { %v883_v31 = vmax.f32 %v704_v2, 0.0  ;;  %v706_v33 = vpop.f32.mrb[103].mxu0 }
 0x1d5   :  { %v884_v34 = vmax.f32 %v706_v33, 0.0 }
 0x1d6   :  { %v3567_v36 = vpack.c.bf16 %v883_v31, %v881_v29 }
 0x1d7   :  { %v3569_v37 = vpack.c.bf16 %v884_v34, %v882_v30  ;;  %v710_v39 = vpop.f32.mrb[104].mxu0 }
 0x1d8   :  { %3966 = vst [vmem:[#allocation13_spill] sm:$0xff] %v3567_v36  ;;  %v712_v40 = vpop.f32.mrb[105].mxu0  ;;  %v885_v42 = vmax.f32 %v710_v39, 0.0 }
 0x1d9   :  { %v886_v43 = vmax.f32 %v712_v40, 0.0 }
 0x1db   :  { %v716_v44 = vpop.f32.mrb[106].mxu0 }
 0x1dc   :  { %v887_v45 = vmax.f32 %v716_v44, 0.0  ;;  %v718_v46 = vpop.f32.mrb[107].mxu0 }
 0x1dd   :  { %v888_v47 = vmax.f32 %v718_v46, 0.0 }
 0x1de   :  { %v3571_v48 = vpack.c.bf16 %v887_v45, %v885_v42 }
 0x1df   :  { %v3573_v49 = vpack.c.bf16 %v888_v47, %v886_v43  ;;  %v722_v50 = vpop.f32.mrb[108].mxu0 }
 0x1e0   :  { %3967 = vst [vmem:[#allocation14_spill] sm:$0xff] %v3571_v48  ;;  %v724_v51 = vpop.f32.mrb[109].mxu0  ;;  %v889_v53 = vmax.f32 %v722_v50, 0.0 }
 0x1e1   :  { %3968 = vst [vmem:[#allocation15_spill] sm:$0xff] %v3573_v49  ;;  %v890_v54 = vmax.f32 %v724_v51, 0.0 }
 0x1e3   :  { %v728_v57 = vpop.f32.mrb[110].mxu0 }
 0x1e4   :  { %v891_v58 = vmax.f32 %v728_v57, 0.0  ;;  %v730_v60 = vpop.f32.mrb[111].mxu0 }
 0x1e5   :  { %v892_v61 = vmax.f32 %v730_v60, 0.0 }
 0x1e6   :  { %v3575_v62 = vpack.c.bf16 %v891_v58, %v889_v53 }
 0x1e7   :  { %v3577_v63 = vpack.c.bf16 %v892_v61, %v890_v54  ;;  %v734_v0 = vpop.f32.mrb[112].mxu0 }
 0x1e8   :  { %3969 = vst [vmem:[#allocation16_spill] sm:$0xff] %v3575_v62  ;;  %v736_v1 = vpop.f32.mrb[113].mxu0  ;;  %v893_v4 = vmax.f32 %v734_v0, 0.0  ;;  %v1008_v0 = vpop.permute.xlu0 %1007 }
 0x1e9   :  { %3970 = vst [vmem:[#allocation17_spill] sm:$0xff] %v3577_v63  ;;  %v894_v5 = vmax.f32 %v736_v1, 0.0  ;;  %v1018_v1 = vpop.permute.xlu1 %1017 }
 0x1eb   :  { %v740_v7 = vpop.f32.mrb[114].mxu0 }
 0x1ec   :  { %v895_v8 = vmax.f32 %v740_v7, 0.0  ;;  %v742_v9 = vpop.f32.mrb[115].mxu0 }
 0x1ed   :  { %v896_v10 = vmax.f32 %v742_v9, 0.0 }
 0x1ee   :  { %v3579_v14 = vpack.c.bf16 %v895_v8, %v893_v4  ;;  %v1013_v4 = vpop.permute.xlu0 %1012  ;;  %v1493_v8 = vlaneseq }
 0x1ef   :  { %v3581_v15 = vpack.c.bf16 %v896_v10, %v894_v5  ;;  %v746_v17 = vpop.f32.mrb[116].mxu0  ;;  %v3595_v5 = vpop.permute.xlu1 %1022 }
 0x1f0   :  { %3971 = vst [vmem:[#allocation18_spill] sm:$0xff] %v3579_v14  ;;  %v748_v18 = vpop.f32.mrb[117].mxu0  ;;  %v897_v19 = vmax.f32 %v746_v17, 0.0  ;;  %v3603_v17 = vshrl.u32 %v1493_v8, 7 }
 0x1f1   :  { %3972 = vst [vmem:[#allocation19_spill] sm:$0xff] %v3581_v15  ;;  %v898_v20 = vmax.f32 %v748_v18, 0.0 }
 0x1f2   :  { %v3597_v7 = vpop.permute.xlu0 %1027  ;;  %v3965_v18 = vsub.s32 1, %v3603_v17 }
 0x1f3   :  { %v752_v22 = vpop.f32.mrb[118].mxu0  ;;  %v3599_v9 = vpop.permute.xlu1 %1032 }
 0x1f4   :  { %v899_v23 = vmax.f32 %v752_v22, 0.0  ;;  %v754_v27 = vpop.f32.mrb[119].mxu0 }
 0x1f5   :  { %v900_v28 = vmax.f32 %v754_v27, 0.0 }
 0x1f6   :  { %v3583_v29 = vpack.c.bf16 %v899_v23, %v897_v19  ;;  %v3601_v10 = vpop.permute.xlu0 %1037  ;;  %v3609_v19 = vld [vmem:[%s3958_s5] sm:$0x3] }
 0x1f7   :  { %v3585_v30 = vpack.c.bf16 %v900_v28, %v898_v20  ;;  %v758_v2 = vpop.f32.mrb[120].mxu0  ;;  %v3611_v20 = vpop.permute.xlu1 %1042  ;;  %v1505_v22 = vrot.slane %v3609_v19, %v3965_v18 }
 0x1f8   :  { %3973 = vst [vmem:[#allocation20_spill] sm:$0xff] %v3583_v29  ;;  %v760_v31 = vpop.f32.mrb[121].mxu0  ;;  %v901_v33 = vmax.f32 %v758_v2, 0.0 }
 0x1f9   :  { %3974 = vst [vmem:[#allocation21_spill] sm:$0xff] %v3585_v30  ;;  %v902_v34 = vmax.f32 %v760_v31, 0.0  ;;  %1572 = vmatprep.mubr.f32.mxu1 %v1505_v22 }
 0x1fa   :  { %v3616_v23 = vpop.permute.xlu0 %1047 }
 0x1fb   :  { %v764_v39 = vpop.f32.mrb[122].mxu0  ;;  %v3618_v27 = vpop.permute.xlu1 %1052 }
 0x1fc   :  { %v903_v40 = vmax.f32 %v764_v39, 0.0  ;;  %v766_v42 = vpop.f32.mrb[123].mxu0 }
 0x1fd   :  { %v904_v43 = vmax.f32 %v766_v42, 0.0 }
 0x1fe   :  { %v3587_v44 = vpack.c.bf16 %v903_v40, %v901_v33  ;;  %v3620_v28 = vpop.permute.xlu0 %1057 }
 0x1ff   :  { %v3589_v45 = vpack.c.bf16 %v904_v43, %v902_v34  ;;  %v770_v46 = vpop.f32.mrb[124].mxu0  ;;  %v3622_v2 = vpop.permute.xlu1 %1062 }
 0x200   :  { %3975 = vst [vmem:[#allocation22_spill] sm:$0xff] %v3587_v44  ;;  %v772_v47 = vpop.f32.mrb[125].mxu0  ;;  %v905_v50 = vmax.f32 %v770_v46, 0.0 }
 0x201   :  { %3976 = vst [vmem:[#allocation23_spill] sm:$0xff] %v3589_v45  ;;  %v906_v51 = vmax.f32 %v772_v47, 0.0 }
 0x202   :  { %v3624_v31 = vpop.permute.xlu0 %1067 }
 0x203   :  { %v776_v53 = vpop.f32.mrb[126].mxu0  ;;  %v3626_v33 = vpop.permute.xlu1 %1072 }
 0x204   :  { %v907_v54 = vmax.f32 %v776_v53, 0.0  ;;  %v778_v57 = vpop.f32.mrb[127].mxu0 }
 0x205   :  { %v908_v58 = vmax.f32 %v778_v57, 0.0 }
 0x206   :  { %v3591_v60 = vpack.c.bf16 %v907_v54, %v905_v50  ;;  %v3628_v34 = vpop.permute.xlu0 %1077 }
 0x207   :  { %v3593_v61 = vpack.c.bf16 %v908_v58, %v906_v51  ;;  %v3630_v39 = vpop.permute.xlu1 %1082 }
 0x208   :  { %3977 = vst [vmem:[#allocation24_spill] sm:$0xff] %v3591_v60 }
 0x209   :  { %3978 = vst [vmem:[#allocation25_spill] sm:$0xff] %v3593_v61 }
 0x20a   :  { %v1088_v40 = vpop.permute.xlu0 %1087 }
 0x20b   :  { %v1093_v54 = vpop.permute.xlu1 %1092 }
 0x20e   :  { %v1098_v63 = vpop.permute.xlu0 %1097 }
 0x260   :  { %v1231_v42 = vpop.f32.mrb[128].mxu0  ;;  %v1327_v43 = vpop.f32.mrb[0].mxu1 }
 0x261   :  { %v1233_v46 = vpop.f32.mrb[129].mxu0  ;;  %v1328_v47 = vadd.f32 %v1327_v43, %v1088_v40  ;;  %v1329_v50 = vpop.f32.mrb[1].mxu1  ;;  %v1232_v53 = vadd.f32 %v1231_v42, %v1008_v0 }
 0x262   :  { %v1330_v51 = vadd.f32 %v1329_v50, %v1088_v40  ;;  %v1234_v57 = vadd.f32 %v1233_v46, %v1008_v0 }
 0x263   :  { %v1454_v60 = vmax.f32 %v1328_v47, 0.0  ;;  %v1422_v14 = vmax.f32 %v1232_v53, 0.0 }
 0x264   :  { %v1237_v58 = vpop.f32.mrb[130].mxu0  ;;  %v1333_v8 = vpop.f32.mrb[2].mxu1  ;;  %v1455_v29 = vmax.f32 %v1330_v51, 0.0  ;;  %v1423_v43 = vmax.f32 %v1234_v57, 0.0 }
 0x265   :  { %v1238_v22 = vadd.f32 %v1237_v58, %v1013_v4  ;;  %v1239_v18 = vpop.f32.mrb[131].mxu0  ;;  %v1334_v61 = vadd.f32 %v1333_v8, %v1093_v54  ;;  %v1335_v44 = vpop.f32.mrb[3].mxu1 }
 0x266   :  { %v1240_v45 = vadd.f32 %v1239_v18, %v1013_v4  ;;  %v1336_v30 = vadd.f32 %v1335_v44, %v1093_v54  ;;  %v1103_v18 = vpop.permute.xlu1 %1102 }
 0x267   :  { %v1424_v15 = vmax.f32 %v1238_v22, 0.0  ;;  %v1456_v62 = vmax.f32 %v1334_v61, 0.0  ;;  %v1108_v22 = vpop.permute.xlu0 %1107 }
 0x268   :  { %v1425_v48 = vmax.f32 %v1240_v45, 0.0  ;;  %v1243_v40 = vpop.f32.mrb[132].mxu0  ;;  %v1457_v42 = vmax.f32 %v1336_v30, 0.0  ;;  %v1339_v50 = vpop.f32.mrb[4].mxu1 }
 0x269   :  { %v2425_v0 = vpack.c.bf16 %v1424_v15, %v1422_v14  ;;  %v1245_v46 = vpop.f32.mrb[133].mxu0  ;;  %v3632_v49 = vpack.c.bf16 %v1456_v62, %v1454_v60  ;;  %v1340_v58 = vadd.f32 %v1339_v50, %v1098_v63  ;;  %v1341_v47 = vpop.f32.mrb[5].mxu1  ;;  %v1244_v44 = vadd.f32 %v1243_v40, %v1018_v1 }
 0x26a   :  { %v2423_v8 = vpack.c.bf16 %v1425_v48, %v1423_v43  ;;  %v3634_v36 = vpack.c.bf16 %v1457_v42, %v1455_v29  ;;  %v1342_v4 = vadd.f32 %v1341_v47, %v1098_v63  ;;  %v1246_v51 = vadd.f32 %v1245_v46, %v1018_v1 }
 0x26b   :  { %v1458_v14 = vmax.f32 %v1340_v58, 0.0  ;;  %v1426_v29 = vmax.f32 %v1244_v44, 0.0  ;;  %v1113_v44 = vpop.permute.xlu1 %1112 }
 0x26c   :  { %v1249_v61 = vpop.f32.mrb[134].mxu0  ;;  %2424 = vmatprep.subr.bf16.mxu1 %v2423_v8  ;;  %v1345_v53 = vpop.f32.mrb[6].mxu1  ;;  %v1459_v54 = vmax.f32 %v1342_v4, 0.0  ;;  %v1427_v43 = vmax.f32 %v1246_v51, 0.0 }
 0x26d   :  { %v1250_v45 = vadd.f32 %v1249_v61, %v3595_v5  ;;  %v1251_v30 = vpop.f32.mrb[135].mxu0  ;;  %2426 = vmatpush1.bf16.msra.mxu1 %v2425_v0  ;;  %v1346_v15 = vadd.f32 %v1345_v53, %v1103_v18  ;;  %v1347_v62 = vpop.f32.mrb[7].mxu1 }
 0x26e   :  { %v1252_v60 = vadd.f32 %v1251_v30, %v3595_v5  ;;  %v1348_v48 = vadd.f32 %v1347_v62, %v1103_v18 }
 0x26f   :  { %v1428_v57 = vmax.f32 %v1250_v45, 0.0  ;;  %v1460_v63 = vmax.f32 %v1346_v15, 0.0 }
 0x270   :  { %v1429_v1 = vmax.f32 %v1252_v60, 0.0  ;;  %v1255_v40 = vpop.f32.mrb[136].mxu0  ;;  %v1461_v42 = vmax.f32 %v1348_v48, 0.0  ;;  %v1351_v50 = vpop.f32.mrb[8].mxu1 }
 0x271   :  { %v2429_v46 = vpack.c.bf16 %v1428_v57, %v1426_v29  ;;  %v1257_v47 = vpop.f32.mrb[137].mxu0  ;;  %v3638_v8 = vpack.c.bf16 %v1460_v63, %v1458_v14  ;;  %v1352_v0 = vadd.f32 %v1351_v50, %v1108_v22  ;;  %v1353_v58 = vpop.f32.mrb[9].mxu1  ;;  %v1256_v4 = vadd.f32 %v1255_v40, %v3597_v7 }
 0x272   :  { %v2427_v61 = vpack.c.bf16 %v1429_v1, %v1427_v43  ;;  %v3640_v53 = vpack.c.bf16 %v1461_v42, %v1459_v54  ;;  %v1354_v5 = vadd.f32 %v1353_v58, %v1108_v22  ;;  %v1258_v18 = vadd.f32 %v1257_v47, %v3597_v7  ;;  %v1118_v43 = vpop.permute.xlu0 %1117 }
 0x273   :  { %v1462_v14 = vmax.f32 %v1352_v0, 0.0  ;;  %v1430_v57 = vmax.f32 %v1256_v4, 0.0  ;;  %v1123_v4 = vpop.permute.xlu1 %1122 }
 0x274   :  { %v1261_v51 = vpop.f32.mrb[138].mxu0  ;;  %2428 = vmatprep.subr.bf16.mxu1 %v2427_v61  ;;  %v1357_v45 = vpop.f32.mrb[10].mxu1  ;;  %v1463_v54 = vmax.f32 %v1354_v5, 0.0  ;;  %v1431_v1 = vmax.f32 %v1258_v18, 0.0 }
 0x275   :  { %v1262_v30 = vadd.f32 %v1261_v51, %v3599_v9  ;;  %v1263_v15 = vpop.f32.mrb[139].mxu0  ;;  %2430 = vmatpush1.bf16.msra.mxu1 %v2429_v46  ;;  %v1358_v62 = vadd.f32 %v1357_v45, %v1113_v44  ;;  %v1359_v60 = vpop.f32.mrb[11].mxu1 }
 0x276   :  { %v1264_v48 = vadd.f32 %v1263_v15, %v3599_v9  ;;  %v1360_v29 = vadd.f32 %v1359_v60, %v1113_v44 }
 0x277   :  { %v1432_v63 = vmax.f32 %v1262_v30, 0.0  ;;  %v1464_v22 = vmax.f32 %v1358_v62, 0.0 }
 0x278   :  { %v1433_v7 = vmax.f32 %v1264_v48, 0.0  ;;  %v1267_v40 = vpop.f32.mrb[140].mxu0  ;;  %v1465_v42 = vmax.f32 %v1360_v29, 0.0  ;;  %v1363_v50 = vpop.f32.mrb[12].mxu1 }
 0x279   :  { %v2433_v47 = vpack.c.bf16 %v1432_v63, %v1430_v57  ;;  %v1269_v58 = vpop.f32.mrb[141].mxu0  ;;  %v3646_v61 = vpack.c.bf16 %v1464_v22, %v1462_v14  ;;  %v1364_v46 = vadd.f32 %v1363_v50, %v1118_v43  ;;  %v1365_v0 = vpop.f32.mrb[13].mxu1  ;;  %v1268_v5 = vadd.f32 %v1267_v40, %v3601_v10 }
 0x27a   :  { %v2431_v51 = vpack.c.bf16 %v1433_v7, %v1431_v1  ;;  %v3648_v45 = vpack.c.bf16 %v1465_v42, %v1463_v54  ;;  %v1366_v9 = vadd.f32 %v1365_v0, %v1118_v43  ;;  %v1270_v44 = vadd.f32 %v1269_v58, %v3601_v10 }
 0x27b   :  { %v1466_v14 = vmax.f32 %v1364_v46, 0.0  ;;  %v1434_v63 = vmax.f32 %v1268_v5, 0.0  ;;  %v1133_v5 = vpop.permute.xlu1 %1132 }
 0x27c   :  { %v1273_v18 = vpop.f32.mrb[142].mxu0  ;;  %2432 = vmatprep.subr.bf16.mxu1 %v2431_v51  ;;  %v1369_v30 = vpop.f32.mrb[14].mxu1  ;;  %v1467_v54 = vmax.f32 %v1366_v9, 0.0  ;;  %v1435_v1 = vmax.f32 %v1270_v44, 0.0 }
 0x27d   :  { %v1274_v15 = vadd.f32 %v1273_v18, %v3611_v20  ;;  %v1275_v62 = vpop.f32.mrb[143].mxu0  ;;  %2434 = vmatpush1.bf16.msra.mxu1 %v2433_v47  ;;  %v1370_v60 = vadd.f32 %v1369_v30, %v1123_v4  ;;  %v1371_v48 = vpop.f32.mrb[15].mxu1 }
 0x27e   :  { %v1276_v29 = vadd.f32 %v1275_v62, %v3611_v20  ;;  %v1372_v57 = vadd.f32 %v1371_v48, %v1123_v4  ;;  %v1128_v51 = vpop.permute.xlu0 %1127 }
 0x27f   :  { %v1436_v22 = vmax.f32 %v1274_v15, 0.0  ;;  %v1468_v43 = vmax.f32 %v1370_v60, 0.0 }
 0x280   :  { %v1437_v7 = vmax.f32 %v1276_v29, 0.0  ;;  %v1279_v10 = vpop.f32.mrb[144].mxu0  ;;  %v1469_v40 = vmax.f32 %v1372_v57, 0.0  ;;  %v1375_v42 = vpop.f32.mrb[16].mxu1 }
 0x281   :  { %v2437_v50 = vpack.c.bf16 %v1436_v22, %v1434_v63  ;;  %v1281_v58 = vpop.f32.mrb[145].mxu0  ;;  %v3654_v0 = vpack.c.bf16 %v1468_v43, %v1466_v14  ;;  %v1377_v47 = vpop.f32.mrb[17].mxu1  ;;  %v1280_v20 = vadd.f32 %v1279_v10, %v3616_v23  ;;  %v1376_v9 = vadd.f32 %v1375_v42, %v1128_v51 }
 0x282   :  { %v2435_v46 = vpack.c.bf16 %v1437_v7, %v1435_v1  ;;  %v3656_v18 = vpack.c.bf16 %v1469_v40, %v1467_v54  ;;  %v1282_v4 = vadd.f32 %v1281_v58, %v3616_v23  ;;  %v1378_v30 = vadd.f32 %v1377_v47, %v1128_v51 }
 0x283   :  { %v1438_v57 = vmax.f32 %v1280_v20, 0.0  ;;  %v1470_v22 = vmax.f32 %v1376_v9, 0.0  ;;  %v1143_v9 = vpop.permute.xlu1 %1142 }
 0x284   :  { %v1285_v44 = vpop.f32.mrb[146].mxu0  ;;  %2436 = vmatprep.subr.bf16.mxu1 %v2435_v46  ;;  %v1381_v15 = vpop.f32.mrb[18].mxu1  ;;  %v1439_v1 = vmax.f32 %v1282_v4, 0.0  ;;  %v1471_v10 = vmax.f32 %v1378_v30, 0.0 }
 0x285   :  { %v1286_v62 = vadd.f32 %v1285_v44, %v3618_v27  ;;  %v1287_v60 = vpop.f32.mrb[147].mxu0  ;;  %2438 = vmatpush1.bf16.msra.mxu1 %v2437_v50  ;;  %v1382_v14 = vadd.f32 %v1381_v15, %v1133_v5  ;;  %v1383_v48 = vpop.f32.mrb[19].mxu1 }
 0x286   :  { %v1288_v29 = vadd.f32 %v1287_v60, %v3618_v27  ;;  %v1384_v54 = vadd.f32 %v1383_v48, %v1133_v5  ;;  %v1138_v44 = vpop.permute.xlu0 %1137 }
 0x287   :  { %v1440_v63 = vmax.f32 %v1286_v62, 0.0  ;;  %v1472_v43 = vmax.f32 %v1382_v14, 0.0 }
 0x288   :  { %v1441_v7 = vmax.f32 %v1288_v29, 0.0  ;;  %v1291_v23 = vpop.f32.mrb[148].mxu0  ;;  %v1473_v40 = vmax.f32 %v1384_v54, 0.0  ;;  %v1387_v42 = vpop.f32.mrb[20].mxu1 }
 0x289   :  { %v2441_v58 = vpack.c.bf16 %v1440_v63, %v1438_v57  ;;  %v1293_v47 = vpop.f32.mrb[149].mxu0  ;;  %v3662_v46 = vpack.c.bf16 %v1472_v43, %v1470_v22  ;;  %v1389_v50 = vpop.f32.mrb[21].mxu1  ;;  %v1292_v27 = vadd.f32 %v1291_v23, %v3620_v28  ;;  %v1388_v20 = vadd.f32 %v1387_v42, %v1138_v44 }
 0x28a   :  { %v2439_v51 = vpack.c.bf16 %v1441_v7, %v1439_v1  ;;  %v3664_v15 = vpack.c.bf16 %v1473_v40, %v1471_v10  ;;  %v1294_v5 = vadd.f32 %v1293_v47, %v3620_v28  ;;  %v1390_v30 = vadd.f32 %v1389_v50, %v1138_v44 }
 0x28b   :  { %v1442_v63 = vmax.f32 %v1292_v27, 0.0  ;;  %v1474_v43 = vmax.f32 %v1388_v20, 0.0  ;;  %v1153_v20 = vpop.permute.xlu1 %1152 }
 0x28c   :  { %v1297_v4 = vpop.f32.mrb[150].mxu0  ;;  %2440 = vmatprep.subr.bf16.mxu1 %v2439_v51  ;;  %v1393_v62 = vpop.f32.mrb[22].mxu1  ;;  %v1443_v7 = vmax.f32 %v1294_v5, 0.0  ;;  %v1475_v10 = vmax.f32 %v1390_v30, 0.0 }
 0x28d   :  { %v1298_v60 = vadd.f32 %v1297_v4, %v3622_v2  ;;  %v1299_v14 = vpop.f32.mrb[151].mxu0  ;;  %2442 = vmatpush1.bf16.msra.mxu1 %v2441_v58  ;;  %v1394_v48 = vadd.f32 %v1393_v62, %v1143_v9  ;;  %v1395_v29 = vpop.f32.mrb[23].mxu1 }
 0x28e   :  { %v1300_v54 = vadd.f32 %v1299_v14, %v3622_v2  ;;  %v1396_v57 = vadd.f32 %v1395_v29, %v1143_v9  ;;  %v1148_v4 = vpop.permute.xlu0 %1147 }
 0x28f   :  { %v1444_v22 = vmax.f32 %v1298_v60, 0.0  ;;  %v1476_v1 = vmax.f32 %v1394_v48, 0.0 }
 0x290   :  { %v1445_v23 = vmax.f32 %v1300_v54, 0.0  ;;  %v1303_v28 = vpop.f32.mrb[152].mxu0  ;;  %v1477_v40 = vmax.f32 %v1396_v57, 0.0  ;;  %v1399_v42 = vpop.f32.mrb[24].mxu1 }
 0x291   :  { %v2445_v47 = vpack.c.bf16 %v1444_v22, %v1442_v63  ;;  %v1305_v50 = vpop.f32.mrb[153].mxu0  ;;  %v3670_v51 = vpack.c.bf16 %v1476_v1, %v1474_v43  ;;  %v1401_v58 = vpop.f32.mrb[25].mxu1  ;;  %v1304_v2 = vadd.f32 %v1303_v28, %v3624_v31  ;;  %v1400_v27 = vadd.f32 %v1399_v42, %v1148_v4 }
 0x292   :  { %v2443_v44 = vpack.c.bf16 %v1445_v23, %v1443_v7  ;;  %v3672_v62 = vpack.c.bf16 %v1477_v40, %v1475_v10  ;;  %v1306_v9 = vadd.f32 %v1305_v50, %v3624_v31  ;;  %v1402_v30 = vadd.f32 %v1401_v58, %v1148_v4 }
 0x293   :  { %v1446_v22 = vmax.f32 %v1304_v2, 0.0  ;;  %v1478_v1 = vmax.f32 %v1400_v27, 0.0  ;;  %v1163_v2 = vpop.permute.xlu1 %1162 }
 0x294   :  { %v1309_v5 = vpop.f32.mrb[154].mxu0  ;;  %2444 = vmatprep.subr.bf16.mxu1 %v2443_v44  ;;  %v1405_v60 = vpop.f32.mrb[26].mxu1  ;;  %v1447_v23 = vmax.f32 %v1306_v9, 0.0  ;;  %v1479_v10 = vmax.f32 %v1402_v30, 0.0 }
 0x295   :  { %v1310_v14 = vadd.f32 %v1309_v5, %v3626_v33  ;;  %v1311_v48 = vpop.f32.mrb[155].mxu0  ;;  %2446 = vmatpush1.bf16.msra.mxu1 %v2445_v47  ;;  %v1406_v29 = vadd.f32 %v1405_v60, %v1153_v20  ;;  %v1407_v54 = vpop.f32.mrb[27].mxu1 }
 0x296   :  { %v1312_v57 = vadd.f32 %v1311_v48, %v3626_v33  ;;  %v1408_v63 = vadd.f32 %v1407_v54, %v1153_v20  ;;  %v1158_v5 = vpop.permute.xlu0 %1157 }
 0x297   :  { %v1448_v43 = vmax.f32 %v1310_v14, 0.0  ;;  %v1480_v7 = vmax.f32 %v1406_v29, 0.0 }
 0x298   :  { %v1449_v28 = vmax.f32 %v1312_v57, 0.0  ;;  %v1315_v31 = vpop.f32.mrb[156].mxu0  ;;  %v1481_v40 = vmax.f32 %v1408_v63, 0.0  ;;  %v1411_v42 = vpop.f32.mrb[28].mxu1 }
 0x299   :  { %v2449_v50 = vpack.c.bf16 %v1448_v43, %v1446_v22  ;;  %v1317_v58 = vpop.f32.mrb[157].mxu0  ;;  %v2481_v44 = vpack.c.bf16 %v1480_v7, %v1478_v1  ;;  %v1413_v4 = vpop.f32.mrb[29].mxu1  ;;  %v1316_v33 = vadd.f32 %v1315_v31, %v3628_v34  ;;  %v1412_v20 = vadd.f32 %v1411_v42, %v1158_v5 }
 0x29a   :  { %v2447_v47 = vpack.c.bf16 %v1449_v28, %v1447_v23  ;;  %v2479_v60 = vpack.c.bf16 %v1481_v40, %v1479_v10  ;;  %v1318_v27 = vadd.f32 %v1317_v58, %v3628_v34  ;;  %v1414_v9 = vadd.f32 %v1413_v4, %v1158_v5  ;;  %v1599_v5 = vld [vmem:[%s3960_s7 + $0xa0] sm:$0xff] }
 0x29b   :  { %v1450_v43 = vmax.f32 %v1316_v33, 0.0  ;;  %v1482_v7 = vmax.f32 %v1412_v20, 0.0  ;;  %v1601_v33 = vld [vmem:[%s3960_s7 + $0xb0] sm:$0xff]  ;;  %v1604_v20 = vld [vmem:[%s3960_s7 + $0xc8] sm:$0xff] }
 0x29c   :  { %v1321_v14 = vpop.f32.mrb[158].mxu0  ;;  %2448 = vmatprep.subr.bf16.mxu1 %v2447_v47  ;;  %v1417_v48 = vpop.f32.mrb[30].mxu1  ;;  %v1451_v28 = vmax.f32 %v1318_v27, 0.0  ;;  %v1483_v34 = vmax.f32 %v1414_v9, 0.0  ;;  %v1600_v47 = vld [vmem:[%s3960_s7 + $0xa8] sm:$0xff]  ;;  %v1606_v27 = vld [vmem:[%s3960_s7 + $0xd8] sm:$0xff] }
 0x29d   :  { %v1322_v30 = vadd.f32 %v1321_v14, %v3630_v39  ;;  %v1323_v29 = vpop.f32.mrb[159].mxu0  ;;  %2450 = vmatpush1.bf16.msra.mxu1 %v2449_v50  ;;  %v1418_v54 = vadd.f32 %v1417_v48, %v1163_v2  ;;  %v1419_v57 = vpop.f32.mrb[31].mxu1  ;;  %v1598_v50 = vld [vmem:[%s3960_s7 + $0x98] sm:$0xff]  ;;  %v1605_v14 = vld [vmem:[%s3960_s7 + $0xd0] sm:$0xff]  ;;  %v1608_v9 = vld [vmem:[%s3960_s7 + $0xe8] sm:$0xff] }
 0x29e   :  { %v1324_v63 = vadd.f32 %v1323_v29, %v3630_v39  ;;  %v1420_v22 = vadd.f32 %v1419_v57, %v1163_v2  ;;  %v1580_v39 = vld [vmem:[%s3960_s7 + $0x8] sm:$0xff]  ;;  %v1603_v2 = vld [vmem:[%s3960_s7 + $0xc0] sm:$0xff]  ;;  %v1609_v29 = vld [vmem:[%s3960_s7 + $0xf0] sm:$0xff] }
 0x29f   :  { %v1452_v1 = vmax.f32 %v1322_v30, 0.0  ;;  %v1484_v23 = vmax.f32 %v1418_v54, 0.0  ;;  %v1607_v48 = vld [vmem:[%s3960_s7 + $0xe0] sm:$0xff]  ;;  %v1610_v30 = vld [vmem:[%s3960_s7 + $0xf8] sm:$0xff]  ;;  %v1612_v54 = vld [vmem:[%s3960_s7 + $0x108] sm:$0xff] }
 0x2a0   :  { %v1453_v31 = vmax.f32 %v1324_v63, 0.0  ;;  %v1485_v10 = vmax.f32 %v1420_v22, 0.0  ;;  %v1611_v57 = vld [vmem:[%s3960_s7 + $0x100] sm:$0xff]  ;;  %v1614_v63 = vld [vmem:[%s3960_s7 + $0x118] sm:$0xff]  ;;  %v1613_v22 = vld [vmem:[%s3960_s7 + $0x110] sm:$0xff] }
 0x2a1   :  { %v2453_v40 = vpack.c.bf16 %v1452_v1, %v1450_v43  ;;  %v2485_v42 = vpack.c.bf16 %v1484_v23, %v1482_v7  ;;  %v1616_v43 = vld [vmem:[%s3960_s7 + $0x128] sm:$0xff]  ;;  %v1615_v1 = vld [vmem:[%s3960_s7 + $0x120] sm:$0xff]  ;;  %v1618_v7 = vld [vmem:[%s3960_s7 + $0x138] sm:$0xff] }
 0x2a2   :  { %v2451_v58 = vpack.c.bf16 %v1453_v31, %v1451_v28  ;;  %v2483_v4 = vpack.c.bf16 %v1485_v10, %v1483_v34  ;;  %v1617_v23 = vld [vmem:[%s3960_s7 + $0x130] sm:$0xff]  ;;  %v1620_v28 = vld [vmem:[%s3960_s7 + $0x148] sm:$0xff]  ;;  %v1619_v31 = vld [vmem:[%s3960_s7 + $0x140] sm:$0xff] }
 0x2a3   :  { %v1622_v34 = vld [vmem:[%s3960_s7 + $0x158] sm:$0xff]  ;;  %v1621_v10 = vld [vmem:[%s3960_s7 + $0x150] sm:$0xff] }
 0x2a4   :  { %2452 = vmatprep.subr.bf16.mxu1 %v2451_v58  ;;  %v1626_v58 = vld [vmem:[%s3960_s7 + $0x178] sm:$0xff] }
 0x2a5   :  { %2454 = vmatpush1.bf16.msra.mxu1 %v2453_v40  ;;  %v1624_v40 = vld [vmem:[%s3960_s7 + $0x168] sm:$0xff] }
 0x2a6   :  { %2456 = vmatprep.subr.bf16.mxu1 %v3634_v36  ;;  %v3695_v36 = vsub.s32 0, %v3603_v17 }
 0x2a9   :  { %2458 = vmatpush1.bf16.msra.mxu1 %v3632_v49  ;;  %v1501_v49 = vrot.slane %v3609_v19, %v3695_v36  ;;  %v1585_v19 = vld [vmem:[%s3960_s7 + $0x30] sm:$0xff] }
 0x2aa   :  { %2460 = vmatprep.subr.bf16.mxu1 %v3640_v53  ;;  %v1587_v53 = vld [vmem:[%s3960_s7 + $0x40] sm:$0xff] }
 0x2ad   :  { %2462 = vmatpush1.bf16.msra.mxu1 %v3638_v8  ;;  %v1588_v8 = vld [vmem:[%s3960_s7 + $0x48] sm:$0xff] }
 0x2ae   :  { %2464 = vmatprep.subr.bf16.mxu1 %v3648_v45  ;;  %v1589_v45 = vld [vmem:[%s3960_s7 + $0x50] sm:$0xff] }
 0x2b1   :  { %2466 = vmatpush1.bf16.msra.mxu1 %v3646_v61  ;;  %v1590_v61 = vld [vmem:[%s3960_s7 + $0x58] sm:$0xff] }
 0x2b2   :  { %2468 = vmatprep.subr.bf16.mxu1 %v3656_v18  ;;  %v1591_v18 = vld [vmem:[%s3960_s7 + $0x60] sm:$0xff] }
 0x2b5   :  { %2470 = vmatpush1.bf16.msra.mxu1 %v3654_v0  ;;  %v1592_v0 = vld [vmem:[%s3960_s7 + $0x68] sm:$0xff] }
 0x2b6   :  { %2472 = vmatprep.subr.bf16.mxu1 %v3664_v15  ;;  %v1593_v15 = vld [vmem:[%s3960_s7 + $0x70] sm:$0xff] }
 0x2b9   :  { %2474 = vmatpush1.bf16.msra.mxu1 %v3662_v46  ;;  %v1594_v46 = vld [vmem:[%s3960_s7 + $0x78] sm:$0xff] }
 0x2ba   :  { %2476 = vmatprep.subr.bf16.mxu1 %v3672_v62  ;;  %v1595_v62 = vld [vmem:[%s3960_s7 + $0x80] sm:$0xff] }
 0x2bd   :  { %2478 = vmatpush1.bf16.msra.mxu1 %v3670_v51  ;;  %v1596_v51 = vld [vmem:[%s3960_s7 + $0x88] sm:$0xff] }
 0x2be   :  { %2480 = vmatprep.subr.bf16.mxu1 %v2479_v60  ;;  %v1602_v60 = vld [vmem:[%s3960_s7 + $0xb8] sm:$0xff] }
 0x2c1   :  { %2482 = vmatpush1.bf16.msra.mxu1 %v2481_v44  ;;  %v1597_v44 = vld [vmem:[%s3960_s7 + $0x90] sm:$0xff] }
 0x2c2   :  { %2484 = vmatprep.subr.bf16.mxu1 %v2483_v4  ;;  %v1625_v4 = vld [vmem:[%s3960_s7 + $0x170] sm:$0xff] }
 0x2c5   :  { %2486 = vmatpush1.bf16.msra.mxu1 %v2485_v42  ;;  %v1623_v42 = vld [vmem:[%s3960_s7 + $0x160] sm:$0xff] }
 0x2c6   :  { %2488 = vmatprep.subr.bf16.mxu1 %v3371_v6  ;;  %v3980_v6 = vld [vmem:[#allocation15_spill] sm:$0xff] }
 0x2c8   :  { %1573 = vmatmul.mubr.f32.vlgmr.msra.gmra.mrb[32].mxu1 %v1501_v49  ;;  %v1628_v49 = vld [vmem:[%s3960_s7 + $0x188] sm:$0xff] }
 0x2c9   :  { %2490 = vmatpush1.bf16.msra.mxu1 %v3363_v3  ;;  %1899 = vmatprep.mubr.f32.mxu1 %v1580_v39  ;;  %v3979_v3 = vld [vmem:[#allocation13_spill] sm:$0xff]  ;;  %v1627_v39 = vld [vmem:[%s3960_s7 + $0x180] sm:$0xff] }
 0x2ca   :  { %2492 = vmatprep.subr.bf16.mxu1 %v3399_v24  ;;  %v3982_v24 = vld [vmem:[#allocation17_spill] sm:$0xff] }
 0x2cd   :  { %2494 = vmatpush1.bf16.msra.mxu1 %v3391_v21  ;;  %v3981_v21 = vld [vmem:[#allocation14_spill] sm:$0xff] }
 0x2ce   :  { %2496 = vmatprep.subr.bf16.mxu1 %v3427_v41  ;;  %v3984_v41 = vld [vmem:[#allocation19_spill] sm:$0xff] }
 0x2d1   :  { %2498 = vmatpush1.bf16.msra.mxu1 %v3419_v38  ;;  %v3983_v38 = vld [vmem:[#allocation16_spill] sm:$0xff] }
 0x2d2   :  { %2500 = vmatprep.subr.bf16.mxu1 %v3455_v59  ;;  %v3986_v59 = vld [vmem:[#allocation21_spill] sm:$0xff] }
 0x2d5   :  { %2502 = vmatpush1.bf16.msra.mxu1 %v3447_v56  ;;  %v3985_v56 = vld [vmem:[#allocation18_spill] sm:$0xff] }
 0x2d6   :  { %2504 = vmatprep.subr.bf16.mxu1 %v3483_v16  ;;  %v3988_v16 = vld [vmem:[#allocation23_spill] sm:$0xff] }
 0x2d9   :  { %2506 = vmatpush1.bf16.msra.mxu1 %v3475_v13  ;;  %v3987_v13 = vld [vmem:[#allocation20_spill] sm:$0xff] }
 0x2da   :  { %2508 = vmatprep.subr.bf16.mxu1 %v3511_v35  ;;  %v3990_v35 = vld [vmem:[#allocation25_spill] sm:$0xff] }
 0x2dd   :  { %2510 = vmatpush1.bf16.msra.mxu1 %v3503_v32  ;;  %v3989_v32 = vld [vmem:[#allocation22_spill] sm:$0xff] }
 0x2de   :  { %2512 = vmatprep.subr.bf16.mxu1 %v3539_v55  ;;  %v1579_v55 = vld [vmem:[%s3960_s7] sm:$0xff] }
 0x2e1   :  { %2514 = vmatpush1.bf16.msra.mxu1 %v3531_v52  ;;  %v3991_v52 = vld [vmem:[#allocation24_spill] sm:$0xff] }
 0x2e2   :  { %2516 = vmatprep.subr.bf16.mxu1 %v3561_v12  ;;  %v1581_v12 = vld [vmem:[%s3960_s7 + $0x10] sm:$0xff] }
 0x2e5   :  { %2518 = vmatpush1.bf16.msra.mxu1 %v3559_v11  ;;  %v1582_v11 = vld [vmem:[%s3960_s7 + $0x18] sm:$0xff] }
 0x2e6   :  { %2520 = vmatprep.subr.bf16.mxu1 %v3565_v26  ;;  %v1583_v26 = vld [vmem:[%s3960_s7 + $0x20] sm:$0xff] }
 0x2e9   :  { %2522 = vmatpush1.bf16.msra.mxu1 %v3563_v25  ;;  %v1584_v25 = vld [vmem:[%s3960_s7 + $0x28] sm:$0xff] }
 0x2ea   :  { %2524 = vmatprep.subr.bf16.mxu1 %v3569_v37  ;;  %v1586_v37 = vld [vmem:[%s3960_s7 + $0x38] sm:$0xff] }
 0x2ed   :  { %2526 = vmatpush1.bf16.msra.mxu1 %v3979_v3  ;;  %v1630_v3 = vld [vmem:[%s3960_s7 + $0x198] sm:$0xff] }
 0x2ee   :  { %2528 = vmatprep.subr.bf16.mxu1 %v3980_v6  ;;  %v1629_v6 = vld [vmem:[%s3960_s7 + $0x190] sm:$0xff] }
 0x2f1   :  { %2530 = vmatpush1.bf16.msra.mxu1 %v3981_v21  ;;  %v1632_v21 = vld [vmem:[%s3960_s7 + $0x1a8] sm:$0xff] }
 0x2f2   :  { %2532 = vmatprep.subr.bf16.mxu1 %v3982_v24  ;;  %v1631_v24 = vld [vmem:[%s3960_s7 + $0x1a0] sm:$0xff] }
 0x2f5   :  { %2534 = vmatpush1.bf16.msra.mxu1 %v3983_v38  ;;  %v1634_v38 = vld [vmem:[%s3960_s7 + $0x1b8] sm:$0xff] }
 0x2f6   :  { %2536 = vmatprep.subr.bf16.mxu1 %v3984_v41  ;;  %v1633_v41 = vld [vmem:[%s3960_s7 + $0x1b0] sm:$0xff] }
 0x2f9   :  { %2538 = vmatpush1.bf16.msra.mxu1 %v3985_v56  ;;  %v1636_v56 = vld [vmem:[%s3960_s7 + $0x1c8] sm:$0xff] }
 0x2fa   :  { %2540 = vmatprep.subr.bf16.mxu1 %v3986_v59  ;;  %v1635_v59 = vld [vmem:[%s3960_s7 + $0x1c0] sm:$0xff] }
 0x2fd   :  { %2542 = vmatpush1.bf16.msra.mxu1 %v3987_v13  ;;  %v1638_v13 = vld [vmem:[%s3960_s7 + $0x1d8] sm:$0xff] }
 0x2fe   :  { %2544 = vmatprep.subr.bf16.mxu1 %v3988_v16  ;;  %v1637_v16 = vld [vmem:[%s3960_s7 + $0x1d0] sm:$0xff] }
 0x301   :  { %2546 = vmatpush1.bf16.msra.mxu1 %v3989_v32  ;;  %v1640_v32 = vld [vmem:[%s3960_s7 + $0x1e8] sm:$0xff] }
 0x302   :  { %2548 = vmatprep.subr.bf16.mxu1 %v3990_v35  ;;  %v1639_v35 = vld [vmem:[%s3960_s7 + $0x1e0] sm:$0xff] }
 0x305   :  { %2550 = vmatpush1.bf16.msra.mxu1 %v3991_v52  ;;  %v1642_v52 = vld [vmem:[%s3960_s7 + $0x1f8] sm:$0xff] }
 0x308   :  { %1900 = vmatmul.mubr.f32.vlgmr.msra.gmra.mrb[34].mxu1 %v1579_v55  ;;  %v1641_v55 = vld [vmem:[%s3960_s7 + $0x1f0] sm:$0xff]  ;;  %s2736_s7 = smov [#allocation9]  }
 0x309   :  { %1905 = vmatprep.mubr.f32.mxu1 %v1582_v11 }
 0x30c   :  { %1906 = vmatmul.mubr.f32.gmra.mrb[36].mxu1 %v1581_v12 }
 0x30d   :  { %1911 = vmatprep.mubr.f32.mxu1 %v1584_v25 }
 0x310   :  { %1912 = vmatmul.mubr.f32.gmra.mrb[38].mxu1 %v1583_v26 }
 0x311   :  { %1917 = vmatprep.mubr.f32.mxu1 %v1586_v37  ;;  %v1678_v37 = vpop.permute.xlu0 %1677 }
 0x314   :  { %1918 = vmatmul.mubr.f32.gmra.mrb[40].mxu1 %v1585_v19 }
 0x315   :  { %1923 = vmatprep.mubr.f32.mxu1 %v1588_v8  ;;  %v1683_v8 = vpop.permute.xlu1 %1682 }
 0x318   :  { %1924 = vmatmul.mubr.f32.gmra.mrb[42].mxu1 %v1587_v53 }
 0x319   :  { %1929 = vmatprep.mubr.f32.mxu1 %v1590_v61 }
 0x31c   :  { %1930 = vmatmul.mubr.f32.gmra.mrb[44].mxu1 %v1589_v45  ;;  %v3930_v45 = vld [vmem:[%s3962_s9] sm:$0x3]  ;;  %s2276_s9 = sshll.u32 %s2736_s7, 4  ;;  %s2277_s9 = int_to_ptr.vmem [resolvable:$true] %s2276_s9 }
 0x31d   :  { %1935 = vmatprep.mubr.f32.mxu1 %v1592_v0  ;;  %s2701_s14 = scalar_lea.vmem %s2277_s9, 64  ;;  %p2706_p3 = scmp.lt.s32.totalorder %s2277_s9, %s2277_s9 }
 0x31e   :  { %p2702_p2 = scmp.ne.s32.totalorder %s2277_s9, %s2701_s14  ;;  %p2707_p4 = scmp.lt.s32.totalorder %s2701_s14, %s2701_s14 }
 0x320   :  { %1936 = vmatmul.mubr.f32.gmra.mrb[46].mxu1 %v1591_v18  ;;  %p2708_p5 = por %p2707_p4, %p2706_p3 }
 0x321   :  { %1941 = vmatprep.mubr.f32.mxu1 %v1594_v46  ;;  %v3992_v46 = vsub.s32 1, %v3603_v17 }
 0x322   :  { %p2709_p6 = pnand %p2708_p5, %p2702_p2 }
 0x324   :  { %1942 = vmatmul.mubr.f32.gmra.mrb[48].mxu1 %v1593_v15  ;;  %v2175_v15 = vrot.slane %v3930_v45, %v3992_v46 }
 0x325   :  { %1947 = vmatprep.mubr.f32.mxu1 %v1596_v51 }
 0x328   :  { %1948 = vmatmul.mubr.f32.gmra.mrb[50].mxu1 %v1595_v62 }
 0x329   :  { %1953 = vmatprep.mubr.f32.mxu1 %v1598_v50 }
 0x32c   :  { %1954 = vmatmul.mubr.f32.gmra.mrb[52].mxu1 %v1597_v44 }
 0x32d   :  { %1959 = vmatprep.mubr.f32.mxu1 %v1600_v47 }
 0x330   :  { %1960 = vmatmul.mubr.f32.gmra.mrb[54].mxu1 %v1599_v5 }
 0x331   :  { %1965 = vmatprep.mubr.f32.mxu1 %v1602_v60 }
 0x334   :  { %1966 = vmatmul.mubr.f32.gmra.mrb[56].mxu1 %v1601_v33 }
 0x335   :  { %1971 = vmatprep.mubr.f32.mxu1 %v1604_v20  ;;  %v1688_v20 = vpop.permute.xlu0 %1687 }
 0x338   :  { %1972 = vmatmul.mubr.f32.gmra.mrb[58].mxu1 %v1603_v2 }
 0x339   :  { %1977 = vmatprep.mubr.f32.mxu1 %v1606_v27 }
 0x33c   :  { %1978 = vmatmul.mubr.f32.gmra.mrb[60].mxu1 %v1605_v14  ;;  %v1693_v14 = vpop.permute.xlu1 %1692 }
 0x33d   :  { %1983 = vmatprep.mubr.f32.mxu1 %v1608_v9 }
 0x340   :  { %1984 = vmatmul.mubr.f32.gmra.mrb[62].mxu1 %v1607_v48 }
 0x341   :  { %1989 = vmatprep.mubr.f32.mxu1 %v1610_v30 }
 0x344   :  { %1990 = vmatmul.mubr.f32.gmra.mrb[64].mxu1 %v1609_v29 }
 0x345   :  { %1995 = vmatprep.mubr.f32.mxu1 %v1612_v54 }
 0x348   :  { %1996 = vmatmul.mubr.f32.gmra.mrb[66].mxu1 %v1611_v57 }
 0x349   :  { %2001 = vmatprep.mubr.f32.mxu1 %v1614_v63 }
 0x34c   :  { %2002 = vmatmul.mubr.f32.gmra.mrb[68].mxu1 %v1613_v22 }
 0x34d   :  { %2007 = vmatprep.mubr.f32.mxu1 %v1616_v43 }
 0x350   :  { %2008 = vmatmul.mubr.f32.gmra.mrb[70].mxu1 %v1615_v1 }
 0x351   :  { %2013 = vmatprep.mubr.f32.mxu1 %v1618_v7 }
 0x354   :  { %2014 = vmatmul.mubr.f32.gmra.mrb[72].mxu1 %v1617_v23  ;;  %v1698_v23 = vpop.permute.xlu0 %1697 }
 0x355   :  { %2019 = vmatprep.mubr.f32.mxu1 %v1620_v28 }
 0x358   :  { %2020 = vmatmul.mubr.f32.gmra.mrb[74].mxu1 %v1619_v31 }
 0x359   :  { %2025 = vmatprep.mubr.f32.mxu1 %v1622_v34  ;;  %v1703_v34 = vpop.permute.xlu1 %1702 }
 0x35c   :  { %2026 = vmatmul.mubr.f32.gmra.mrb[76].mxu1 %v1621_v10 }
 0x35d   :  { %2031 = vmatprep.mubr.f32.mxu1 %v1624_v40 }
 0x360   :  { %2032 = vmatmul.mubr.f32.gmra.mrb[78].mxu1 %v1623_v42 }
 0x361   :  { %2037 = vmatprep.mubr.f32.mxu1 %v1626_v58 }
 0x364   :  { %2038 = vmatmul.mubr.f32.gmra.mrb[80].mxu1 %v1625_v4 }
 0x365   :  { %2043 = vmatprep.mubr.f32.mxu1 %v1628_v49 }
 0x368   :  { %2044 = vmatmul.mubr.f32.gmra.mrb[82].mxu1 %v1627_v39 }
 0x369   :  { %2049 = vmatprep.mubr.f32.mxu1 %v1630_v3 }
 0x36c   :  { %2050 = vmatmul.mubr.f32.gmra.mrb[84].mxu1 %v1629_v6 }
 0x36d   :  { %2055 = vmatprep.mubr.f32.mxu1 %v1632_v21 }
 0x370   :  { %2056 = vmatmul.mubr.f32.gmra.mrb[86].mxu1 %v1631_v24 }
 0x371   :  { %2061 = vmatprep.mubr.f32.mxu1 %v1634_v38 }
 0x374   :  { %2062 = vmatmul.mubr.f32.gmra.mrb[88].mxu1 %v1633_v41  ;;  %v1708_v41 = vpop.permute.xlu0 %1707 }
 0x375   :  { %2067 = vmatprep.mubr.f32.mxu1 %v1636_v56 }
 0x378   :  { %2068 = vmatmul.mubr.f32.gmra.mrb[90].mxu1 %v1635_v59 }
 0x379   :  { %2073 = vmatprep.mubr.f32.mxu1 %v1638_v13  ;;  %v1713_v13 = vpop.permute.xlu1 %1712 }
 0x37c   :  { %2074 = vmatmul.mubr.f32.gmra.mrb[92].mxu1 %v1637_v16 }
 0x37d   :  { %2079 = vmatprep.mubr.f32.mxu1 %v1640_v32 }
 0x380   :  { %2080 = vmatmul.mubr.f32.gmra.mrb[94].mxu1 %v1639_v35 }
 0x381   :  { %2085 = vmatprep.mubr.f32.mxu1 %v1642_v52 }
 0x384   :  { %2086 = vmatmul.mubr.f32.gmra.mrb[96].mxu1 %v1641_v55 }
 0x385   :  { %2242 = vmatprep.mubr.f32.mxu1 %v2175_v15  ;;  %v1723_v15 = vpop.permute.xlu1 %1722 }
 0x39b   :  { %v3923_v11 = vpop.f32.mrb[32].mxu1 }
 0x39c   :  { %v3925_v12 = vpop.f32.mrb[33].mxu1 }
 0x3db   :  { %v1901_v25 = vpop.f32.mrb[34].mxu1 }
 0x3dc   :  { %v1903_v26 = vpop.f32.mrb[35].mxu1  ;;  %v1902_v19 = vadd.f32 %v1901_v25, %v1678_v37 }
 0x3dd   :  { %v1904_v53 = vadd.f32 %v1903_v26, %v1678_v37 }
 0x3de   :  { %v2092_v62 = vmax.f32 %v1902_v19, 0.0 }
 0x3df   :  { %v1907_v61 = vpop.f32.mrb[36].mxu1  ;;  %v2093_v44 = vmax.f32 %v1904_v53, 0.0 }
 0x3e0   :  { %v1908_v0 = vadd.f32 %v1907_v61, %v1683_v8  ;;  %v1909_v18 = vpop.f32.mrb[37].mxu1 }
 0x3e1   :  { %v1910_v51 = vadd.f32 %v1909_v18, %v1683_v8 }
 0x3e2   :  { %v2094_v50 = vmax.f32 %v1908_v0, 0.0  ;;  %v1718_v0 = vpop.permute.xlu0 %1717 }
 0x3e3   :  { %v2095_v47 = vmax.f32 %v1910_v51, 0.0  ;;  %v1913_v5 = vpop.f32.mrb[38].mxu1 }
 0x3e4   :  { %v2553_v60 = vpack.c.bf16 %v2094_v50, %v2092_v62  ;;  %v1915_v33 = vpop.f32.mrb[39].mxu1  ;;  %v1914_v27 = vadd.f32 %v1913_v5, %v1688_v20 }
 0x3e5   :  { %v2551_v2 = vpack.c.bf16 %v2095_v47, %v2093_v44  ;;  %v1916_v9 = vadd.f32 %v1915_v33, %v1688_v20 }
 0x3e6   :  { %v2096_v54 = vmax.f32 %v1914_v27, 0.0 }
 0x3e7   :  { %v1919_v48 = vpop.f32.mrb[40].mxu1  ;;  %2552 = vmatprep.subr.bf16.mxu1 %v2551_v2  ;;  %v2097_v63 = vmax.f32 %v1916_v9, 0.0  ;;  %v1728_v9 = vpop.permute.xlu0 %1727 }
 0x3e8   :  { %v1920_v30 = vadd.f32 %v1919_v48, %v1693_v14  ;;  %v1921_v17 = vpop.f32.mrb[41].mxu1  ;;  %2554 = vmatpush1.bf16.msra.mxu1 %v2553_v60 }
 0x3e9   :  { %v1922_v29 = vadd.f32 %v1921_v17, %v1693_v14  ;;  %v1733_v17 = vpop.permute.xlu1 %1732 }
 0x3ea   :  { %v2098_v57 = vmax.f32 %v1920_v30, 0.0 }
 0x3eb   :  { %v2099_v22 = vmax.f32 %v1922_v29, 0.0  ;;  %v1925_v43 = vpop.f32.mrb[42].mxu1 }
 0x3ec   :  { %v2557_v1 = vpack.c.bf16 %v2098_v57, %v2096_v54  ;;  %v1927_v7 = vpop.f32.mrb[43].mxu1  ;;  %v1926_v31 = vadd.f32 %v1925_v43, %v1698_v23 }
 0x3ed   :  { %v2555_v28 = vpack.c.bf16 %v2099_v22, %v2097_v63  ;;  %v1928_v10 = vadd.f32 %v1927_v7, %v1698_v23 }
 0x3ee   :  { %v2100_v49 = vmax.f32 %v1926_v31, 0.0 }
 0x3ef   :  { %v1931_v40 = vpop.f32.mrb[44].mxu1  ;;  %2556 = vmatprep.subr.bf16.mxu1 %v2555_v28  ;;  %v2101_v3 = vmax.f32 %v1928_v10, 0.0  ;;  %v1738_v10 = vpop.permute.xlu0 %1737 }
 0x3f0   :  { %v1932_v42 = vadd.f32 %v1931_v40, %v1703_v34  ;;  %v1933_v58 = vpop.f32.mrb[45].mxu1  ;;  %2558 = vmatpush1.bf16.msra.mxu1 %v2557_v1 }
 0x3f1   :  { %v1934_v4 = vadd.f32 %v1933_v58, %v1703_v34  ;;  %v1743_v58 = vpop.permute.xlu1 %1742 }
 0x3f2   :  { %v2102_v39 = vmax.f32 %v1932_v42, 0.0 }
 0x3f3   :  { %v2103_v6 = vmax.f32 %v1934_v4, 0.0  ;;  %v1937_v21 = vpop.f32.mrb[46].mxu1 }
 0x3f4   :  { %v2561_v24 = vpack.c.bf16 %v2102_v39, %v2100_v49  ;;  %v1939_v38 = vpop.f32.mrb[47].mxu1  ;;  %v1938_v59 = vadd.f32 %v1937_v21, %v1708_v41 }
 0x3f5   :  { %v2559_v56 = vpack.c.bf16 %v2103_v6, %v2101_v3  ;;  %v1940_v16 = vadd.f32 %v1939_v38, %v1708_v41 }
 0x3f6   :  { %v2104_v25 = vmax.f32 %v1938_v59, 0.0 }
 0x3f7   :  { %v1943_v32 = vpop.f32.mrb[48].mxu1  ;;  %2560 = vmatprep.subr.bf16.mxu1 %v2559_v56  ;;  %v2105_v37 = vmax.f32 %v1940_v16, 0.0  ;;  %v1748_v16 = vpop.permute.xlu0 %1747 }
 0x3f8   :  { %v1944_v35 = vadd.f32 %v1943_v32, %v1713_v13  ;;  %v1945_v52 = vpop.f32.mrb[49].mxu1  ;;  %2562 = vmatpush1.bf16.msra.mxu1 %v2561_v24 }
 0x3f9   :  { %v1946_v55 = vadd.f32 %v1945_v52, %v1713_v13  ;;  %v1753_v52 = vpop.permute.xlu1 %1752 }
 0x3fa   :  { %v2106_v26 = vmax.f32 %v1944_v35, 0.0 }
 0x3fb   :  { %v2107_v19 = vmax.f32 %v1946_v55, 0.0  ;;  %v1949_v8 = vpop.f32.mrb[50].mxu1 }
 0x3fc   :  { %v2565_v53 = vpack.c.bf16 %v2106_v26, %v2104_v25  ;;  %v1951_v61 = vpop.f32.mrb[51].mxu1  ;;  %v1950_v46 = vadd.f32 %v1949_v8, %v1718_v0 }
 0x3fd   :  { %v2563_v18 = vpack.c.bf16 %v2107_v19, %v2105_v37  ;;  %v1952_v51 = vadd.f32 %v1951_v61, %v1718_v0 }
 0x3fe   :  { %v2108_v5 = vmax.f32 %v1950_v46, 0.0 }
 0x3ff   :  { %v1955_v62 = vpop.f32.mrb[52].mxu1  ;;  %2564 = vmatprep.subr.bf16.mxu1 %v2563_v18  ;;  %v2109_v33 = vmax.f32 %v1952_v51, 0.0  ;;  %v1758_v51 = vpop.permute.xlu0 %1757 }
 0x400   :  { %v1956_v50 = vadd.f32 %v1955_v62, %v1723_v15  ;;  %v1957_v44 = vpop.f32.mrb[53].mxu1  ;;  %2566 = vmatpush1.bf16.msra.mxu1 %v2565_v53 }
 0x401   :  { %v1958_v47 = vadd.f32 %v1957_v44, %v1723_v15  ;;  %v1763_v44 = vpop.permute.xlu1 %1762 }
 0x402   :  { %v2110_v60 = vmax.f32 %v1956_v50, 0.0 }
 0x403   :  { %v2111_v20 = vmax.f32 %v1958_v47, 0.0  ;;  %v1961_v2 = vpop.f32.mrb[54].mxu1 }
 0x404   :  { %v2569_v27 = vpack.c.bf16 %v2110_v60, %v2108_v5  ;;  %v1963_v14 = vpop.f32.mrb[55].mxu1  ;;  %v1962_v30 = vadd.f32 %v1961_v2, %v1728_v9 }
 0x405   :  { %v2567_v48 = vpack.c.bf16 %v2111_v20, %v2109_v33  ;;  %v1964_v29 = vadd.f32 %v1963_v14, %v1728_v9 }
 0x406   :  { %v2112_v43 = vmax.f32 %v1962_v30, 0.0 }
 0x407   :  { %v1967_v54 = vpop.f32.mrb[56].mxu1  ;;  %2568 = vmatprep.subr.bf16.mxu1 %v2567_v48  ;;  %v2113_v7 = vmax.f32 %v1964_v29, 0.0  ;;  %v1768_v29 = vpop.permute.xlu0 %1767 }
 0x408   :  { %v1968_v57 = vadd.f32 %v1967_v54, %v1733_v17  ;;  %v1969_v63 = vpop.f32.mrb[57].mxu1  ;;  %2570 = vmatpush1.bf16.msra.mxu1 %v2569_v27 }
 0x409   :  { %v1970_v22 = vadd.f32 %v1969_v63, %v1733_v17  ;;  %v1773_v63 = vpop.permute.xlu1 %1772 }
 0x40a   :  { %v2114_v1 = vmax.f32 %v1968_v57, 0.0 }
 0x40b   :  { %v2115_v23 = vmax.f32 %v1970_v22, 0.0  ;;  %v1973_v28 = vpop.f32.mrb[58].mxu1 }
 0x40c   :  { %v2573_v31 = vpack.c.bf16 %v2114_v1, %v2112_v43  ;;  %v1975_v34 = vpop.f32.mrb[59].mxu1  ;;  %v1974_v42 = vadd.f32 %v1973_v28, %v1738_v10 }
 0x40d   :  { %v2571_v40 = vpack.c.bf16 %v2115_v23, %v2113_v7  ;;  %v1976_v4 = vadd.f32 %v1975_v34, %v1738_v10 }
 0x40e   :  { %v2116_v21 = vmax.f32 %v1974_v42, 0.0 }
 0x40f   :  { %v1979_v49 = vpop.f32.mrb[60].mxu1  ;;  %2572 = vmatprep.subr.bf16.mxu1 %v2571_v40  ;;  %v2117_v38 = vmax.f32 %v1976_v4, 0.0  ;;  %v1778_v4 = vpop.permute.xlu0 %1777 }
 0x410   :  { %v1980_v39 = vadd.f32 %v1979_v49, %v1743_v58  ;;  %v1981_v3 = vpop.f32.mrb[61].mxu1  ;;  %2574 = vmatpush1.bf16.msra.mxu1 %v2573_v31 }
 0x411   :  { %v1982_v6 = vadd.f32 %v1981_v3, %v1743_v58  ;;  %v1783_v3 = vpop.permute.xlu1 %1782 }
 0x412   :  { %v2118_v24 = vmax.f32 %v1980_v39, 0.0 }
 0x413   :  { %v2119_v41 = vmax.f32 %v1982_v6, 0.0  ;;  %v1985_v56 = vpop.f32.mrb[62].mxu1 }
 0x414   :  { %v2577_v59 = vpack.c.bf16 %v2118_v24, %v2116_v21  ;;  %v1987_v13 = vpop.f32.mrb[63].mxu1  ;;  %v1986_v35 = vadd.f32 %v1985_v56, %v1748_v16 }
 0x415   :  { %v2575_v32 = vpack.c.bf16 %v2119_v41, %v2117_v38  ;;  %v1988_v55 = vadd.f32 %v1987_v13, %v1748_v16 }
 0x416   :  { %v2120_v8 = vmax.f32 %v1986_v35, 0.0 }
 0x417   :  { %v1991_v25 = vpop.f32.mrb[64].mxu1  ;;  %2576 = vmatprep.subr.bf16.mxu1 %v2575_v32  ;;  %v2121_v61 = vmax.f32 %v1988_v55, 0.0  ;;  %v1788_v55 = vpop.permute.xlu0 %1787 }
 0x418   :  { %v1992_v26 = vadd.f32 %v1991_v25, %v1753_v52  ;;  %v1993_v37 = vpop.f32.mrb[65].mxu1  ;;  %2578 = vmatpush1.bf16.msra.mxu1 %v2577_v59 }
 0x419   :  { %v1994_v19 = vadd.f32 %v1993_v37, %v1753_v52  ;;  %v1793_v37 = vpop.permute.xlu1 %1792 }
 0x41a   :  { %v2122_v53 = vmax.f32 %v1992_v26, 0.0 }
 0x41b   :  { %v2123_v0 = vmax.f32 %v1994_v19, 0.0  ;;  %v1997_v18 = vpop.f32.mrb[66].mxu1 }
 0x41c   :  { %v2581_v46 = vpack.c.bf16 %v2122_v53, %v2120_v8  ;;  %v1999_v15 = vpop.f32.mrb[67].mxu1  ;;  %v1998_v50 = vadd.f32 %v1997_v18, %v1758_v51 }
 0x41d   :  { %v2579_v62 = vpack.c.bf16 %v2123_v0, %v2121_v61  ;;  %v2000_v47 = vadd.f32 %v1999_v15, %v1758_v51 }
 0x41e   :  { %v2124_v2 = vmax.f32 %v1998_v50, 0.0 }
 0x41f   :  { %v2003_v5 = vpop.f32.mrb[68].mxu1  ;;  %2580 = vmatprep.subr.bf16.mxu1 %v2579_v62  ;;  %v2125_v14 = vmax.f32 %v2000_v47, 0.0  ;;  %v1798_v47 = vpop.permute.xlu0 %1797 }
 0x420   :  { %v2004_v60 = vadd.f32 %v2003_v5, %v1763_v44  ;;  %v2005_v33 = vpop.f32.mrb[69].mxu1  ;;  %2582 = vmatpush1.bf16.msra.mxu1 %v2581_v46 }
 0x421   :  { %v2006_v20 = vadd.f32 %v2005_v33, %v1763_v44  ;;  %v1803_v33 = vpop.permute.xlu1 %1802 }
 0x422   :  { %v2126_v27 = vmax.f32 %v2004_v60, 0.0 }
 0x423   :  { %v2127_v9 = vmax.f32 %v2006_v20, 0.0  ;;  %v2009_v48 = vpop.f32.mrb[70].mxu1 }
 0x424   :  { %v2585_v30 = vpack.c.bf16 %v2126_v27, %v2124_v2  ;;  %v2011_v17 = vpop.f32.mrb[71].mxu1  ;;  %v2010_v57 = vadd.f32 %v2009_v48, %v1768_v29 }
 0x425   :  { %v2583_v54 = vpack.c.bf16 %v2127_v9, %v2125_v14  ;;  %v2012_v22 = vadd.f32 %v2011_v17, %v1768_v29 }
 0x426   :  { %v2128_v28 = vmax.f32 %v2010_v57, 0.0 }
 0x427   :  { %v2015_v43 = vpop.f32.mrb[72].mxu1  ;;  %2584 = vmatprep.subr.bf16.mxu1 %v2583_v54  ;;  %v2129_v34 = vmax.f32 %v2012_v22, 0.0  ;;  %v1808_v22 = vpop.permute.xlu0 %1807 }
 0x428   :  { %v2016_v1 = vadd.f32 %v2015_v43, %v1773_v63  ;;  %v2017_v7 = vpop.f32.mrb[73].mxu1  ;;  %2586 = vmatpush1.bf16.msra.mxu1 %v2585_v30 }
 0x429   :  { %v2018_v23 = vadd.f32 %v2017_v7, %v1773_v63  ;;  %v1813_v7 = vpop.permute.xlu1 %1812 }
 0x42a   :  { %v2130_v31 = vmax.f32 %v2016_v1, 0.0 }
 0x42b   :  { %v2131_v10 = vmax.f32 %v2018_v23, 0.0  ;;  %v2021_v40 = vpop.f32.mrb[74].mxu1 }
 0x42c   :  { %v2589_v42 = vpack.c.bf16 %v2130_v31, %v2128_v28  ;;  %v2023_v58 = vpop.f32.mrb[75].mxu1  ;;  %v2022_v39 = vadd.f32 %v2021_v40, %v1778_v4 }
 0x42d   :  { %v2587_v49 = vpack.c.bf16 %v2131_v10, %v2129_v34  ;;  %v2024_v6 = vadd.f32 %v2023_v58, %v1778_v4 }
 0x42e   :  { %v2132_v56 = vmax.f32 %v2022_v39, 0.0 }
 0x42f   :  { %v2027_v21 = vpop.f32.mrb[76].mxu1  ;;  %2588 = vmatprep.subr.bf16.mxu1 %v2587_v49  ;;  %v2133_v13 = vmax.f32 %v2024_v6, 0.0  ;;  %v1818_v6 = vpop.permute.xlu0 %1817 }
 0x430   :  { %v2028_v24 = vadd.f32 %v2027_v21, %v1783_v3  ;;  %v2029_v38 = vpop.f32.mrb[77].mxu1  ;;  %2590 = vmatpush1.bf16.msra.mxu1 %v2589_v42 }
 0x431   :  { %v2030_v41 = vadd.f32 %v2029_v38, %v1783_v3  ;;  %v1823_v38 = vpop.permute.xlu1 %1822 }
 0x432   :  { %v2134_v59 = vmax.f32 %v2028_v24, 0.0 }
 0x433   :  { %v2135_v16 = vmax.f32 %v2030_v41, 0.0  ;;  %v2033_v32 = vpop.f32.mrb[78].mxu1 }
 0x434   :  { %v2593_v35 = vpack.c.bf16 %v2134_v59, %v2132_v56  ;;  %v2035_v52 = vpop.f32.mrb[79].mxu1  ;;  %v2034_v26 = vadd.f32 %v2033_v32, %v1788_v55 }
 0x435   :  { %v2591_v25 = vpack.c.bf16 %v2135_v16, %v2133_v13  ;;  %v2036_v19 = vadd.f32 %v2035_v52, %v1788_v55 }
 0x436   :  { %v2136_v18 = vmax.f32 %v2034_v26, 0.0 }
 0x437   :  { %v2039_v8 = vpop.f32.mrb[80].mxu1  ;;  %2592 = vmatprep.subr.bf16.mxu1 %v2591_v25  ;;  %v2137_v15 = vmax.f32 %v2036_v19, 0.0  ;;  %v1828_v19 = vpop.permute.xlu0 %1827 }
 0x438   :  { %v2040_v53 = vadd.f32 %v2039_v8, %v1793_v37  ;;  %v2041_v61 = vpop.f32.mrb[81].mxu1  ;;  %2594 = vmatpush1.bf16.msra.mxu1 %v2593_v35 }
 0x439   :  { %v2042_v0 = vadd.f32 %v2041_v61, %v1793_v37  ;;  %v1833_v61 = vpop.permute.xlu1 %1832 }
 0x43a   :  { %v2138_v46 = vmax.f32 %v2040_v53, 0.0 }
 0x43b   :  { %v2139_v51 = vmax.f32 %v2042_v0, 0.0  ;;  %v2045_v62 = vpop.f32.mrb[82].mxu1 }
 0x43c   :  { %v2597_v50 = vpack.c.bf16 %v2138_v46, %v2136_v18  ;;  %v2047_v44 = vpop.f32.mrb[83].mxu1  ;;  %v2046_v60 = vadd.f32 %v2045_v62, %v1798_v47 }
 0x43d   :  { %v2595_v5 = vpack.c.bf16 %v2139_v51, %v2137_v15  ;;  %v2048_v20 = vadd.f32 %v2047_v44, %v1798_v47 }
 0x43e   :  { %v2140_v48 = vmax.f32 %v2046_v60, 0.0 }
 0x43f   :  { %v2051_v2 = vpop.f32.mrb[84].mxu1  ;;  %2596 = vmatprep.subr.bf16.mxu1 %v2595_v5  ;;  %v2141_v17 = vmax.f32 %v2048_v20, 0.0  ;;  %v2161_v20 = vpop.permute.xlu0 %2160 }
 0x440   :  { %v2052_v27 = vadd.f32 %v2051_v2, %v1803_v33  ;;  %v2053_v14 = vpop.f32.mrb[85].mxu1  ;;  %2598 = vmatpush1.bf16.msra.mxu1 %v2597_v50  ;;  %v1491_v2 = vpop.permute.xlu1 %1490 }
 0x441   :  { %v2054_v9 = vadd.f32 %v2053_v14, %v1803_v33  ;;  %v2171_v33 = vrot.slane %v3930_v45, %v3695_v36 }
 0x442   :  { %v2142_v30 = vmax.f32 %v2052_v27, 0.0  ;;  %v2166_v27 = vrot.slane %v2161_v20, %v3695_v36 }
 0x443   :  { %v2143_v29 = vmax.f32 %v2054_v9, 0.0  ;;  %v2057_v54 = vpop.f32.mrb[86].mxu1  ;;  %v1496_v9 = vrot.slane %v1491_v2, %v3695_v36 }
 0x444   :  { %v2601_v57 = vpack.c.bf16 %v2142_v30, %v2140_v48  ;;  %v2059_v63 = vpop.f32.mrb[87].mxu1  ;;  %v2058_v1 = vadd.f32 %v2057_v54, %v1808_v22 }
 0x445   :  { %v2599_v43 = vpack.c.bf16 %v2143_v29, %v2141_v17  ;;  %v2060_v23 = vadd.f32 %v2059_v63, %v1808_v22  ;;  %v1575_v29 = vadd.f32 %v3923_v11, %v1496_v9 }
 0x446   :  { %v2144_v40 = vmax.f32 %v2058_v1, 0.0 }
 0x447   :  { %v2063_v28 = vpop.f32.mrb[88].mxu1  ;;  %2600 = vmatprep.subr.bf16.mxu1 %v2599_v43  ;;  %v2145_v58 = vmax.f32 %v2060_v23, 0.0 }
 0x448   :  { %v2064_v31 = vadd.f32 %v2063_v28, %v1813_v7  ;;  %v2065_v34 = vpop.f32.mrb[89].mxu1  ;;  %2602 = vmatpush1.bf16.msra.mxu1 %v2601_v57  ;;  %v1577_v57 = vadd.f32 %v3925_v12, %v1496_v9 }
 0x449   :  { %v2066_v10 = vadd.f32 %v2065_v34, %v1813_v7 }
 0x44a   :  { %v2146_v42 = vmax.f32 %v2064_v31, 0.0 }
 0x44b   :  { %v2147_v4 = vmax.f32 %v2066_v10, 0.0  ;;  %v2069_v49 = vpop.f32.mrb[90].mxu1 }
 0x44c   :  { %v2605_v39 = vpack.c.bf16 %v2146_v42, %v2144_v40  ;;  %v2071_v3 = vpop.f32.mrb[91].mxu1  ;;  %v2070_v24 = vadd.f32 %v2069_v49, %v1818_v6 }
 0x44d   :  { %v2603_v21 = vpack.c.bf16 %v2147_v4, %v2145_v58  ;;  %v2072_v41 = vadd.f32 %v2071_v3, %v1818_v6 }
 0x44e   :  { %v2148_v32 = vmax.f32 %v2070_v24, 0.0 }
 0x44f   :  { %v2075_v56 = vpop.f32.mrb[92].mxu1  ;;  %2604 = vmatprep.subr.bf16.mxu1 %v2603_v21  ;;  %v2149_v52 = vmax.f32 %v2072_v41, 0.0 }
 0x450   :  { %v2076_v59 = vadd.f32 %v2075_v56, %v1823_v38  ;;  %v2077_v13 = vpop.f32.mrb[93].mxu1  ;;  %2606 = vmatpush1.bf16.msra.mxu1 %v2605_v39 }
 0x451   :  { %v2078_v16 = vadd.f32 %v2077_v13, %v1823_v38 }
 0x452   :  { %v2150_v35 = vmax.f32 %v2076_v59, 0.0 }
 0x453   :  { %v2151_v55 = vmax.f32 %v2078_v16, 0.0  ;;  %v2081_v25 = vpop.f32.mrb[94].mxu1 }
 0x454   :  { %v2609_v26 = vpack.c.bf16 %v2150_v35, %v2148_v32  ;;  %v2083_v37 = vpop.f32.mrb[95].mxu1  ;;  %v2082_v53 = vadd.f32 %v2081_v25, %v1828_v19 }
 0x455   :  { %v2607_v8 = vpack.c.bf16 %v2151_v55, %v2149_v52  ;;  %v2084_v0 = vadd.f32 %v2083_v37, %v1828_v19 }
 0x456   :  { %v2152_v62 = vmax.f32 %v2082_v53, 0.0 }
 0x457   :  { %v2087_v18 = vpop.f32.mrb[96].mxu1  ;;  %2608 = vmatprep.subr.bf16.mxu1 %v2607_v8  ;;  %v2153_v44 = vmax.f32 %v2084_v0, 0.0 }
 0x458   :  { %v2088_v46 = vadd.f32 %v2087_v18, %v1833_v61  ;;  %v2089_v15 = vpop.f32.mrb[97].mxu1  ;;  %2610 = vmatpush1.bf16.msra.mxu1 %v2609_v26 }
 0x459   :  { %v2090_v51 = vadd.f32 %v2089_v15, %v1833_v61 }
 0x45a   :  { %v2154_v50 = vmax.f32 %v2088_v46, 0.0 }
 0x45b   :  { %v2155_v47 = vmax.f32 %v2090_v51, 0.0 }
 0x45c   :  { %v2613_v5 = vpack.c.bf16 %v2154_v50, %v2152_v62 }
 0x45d   :  { %v2611_v60 = vpack.c.bf16 %v2155_v47, %v2153_v44 }
 0x45f   :  { %2612 = vmatprep.subr.bf16.mxu1 %v2611_v60 }
 0x460   :  { %2614 = vmatpush1.bf16.msra.mxu1 %v2613_v5 }
 0x463   :  { %2243 = vmatmul.mubr.f32.vlgmr.msra.gmra.mrb[98].mxu1 %v2171_v33 }
 0x536   :  { %v2244_v14 = vpop.f32.mrb[98].mxu1 }
 0x537   :  { %v2245_v48 = vadd.f32 %v2244_v14, %v2166_v27  ;;  %v2246_v30 = vpop.f32.mrb[99].mxu1 }
 0x538   :  { %v2247_v17 = vadd.f32 %v2246_v30, %v2166_v27 }
 0x539   :  { %v2251_v54 = vrot.slane %v2245_v48, 7 }
 0x53a   :  { %v2252_v63 = vrot.slane %v2247_v17, 7 }
 0x53b   :  { %v2256_v45 = vsel %vm2255_vm1, %v1575_v29, %v2251_v54 }
 0x53c   :  { %v2257_v22 = vsel %vm2255_vm1, %v1577_v57, %v2252_v63 }
 0x53d   :  { %v2260_v43 = vcombine.low %v2256_v45, %v2257_v22 }
 0x53f   :  { %2350 = vst.sshfl [vmem:[#allocation9] sm:$0x33 pattern:$0x76325410] %v2260_v43 }
 0x540   :  { %2712 = shalt.err (!%p2709_p6)
}
 0x541   :  { %s2713_s17 = scalar_lea.hbm %s3963_s11, 64 }
 0x542   :  { %p2714_p7 = scmp.ne.s32.totalorder %s3963_s11, %s2713_s17  ;;  %p2717_p8 = scmp.lt.u32.totalorder %s2713_s17, %s3963_s11 }
 0x544   :  { %p2719_p9 = pnand %p2717_p8, %p2714_p7 }
 0x546   :  { %2722 = shalt.err (!%p2719_p9)
}
 0x547   :  { %2279 = dma.vmem_to_hbm [thread:$0]  %s2277_s9, 64, %s3963_s11, [#allocation6]  }
 0x548   :  { %2727 = dma.done.wait [#allocation6], 64  }
 0x549   :  { %2728 = vsyncadd [#allocation6], 4294967232 }
 0x54a   :  { %2283 = vsyncpa [#allocation5], 1 }
 0x54b   :  { %2284 = vsyncpa [#allocation8], 1 }
 0x54c   :  { %2285 = vsyncpa [#allocation6], 1 }

</bundles_post_ra>
